<compile_context>
chip_gen: v6e
topology: v6e:2x2x1
jax: 0.10.0
libtpu: 0.0.40
codegen_flags: <defaults>
</compile_context>

<pallas_src>
import functools
import math

import jax
import jax.numpy as jnp
from jax import lax
from jax.experimental import pallas as pl
from jax.experimental.pallas import tpu as pltpu


def _round_up(x, m):
    return ((x + m - 1) // m) * m


# ---------------------------------------------------------------------------
# Kernel 1: tiled linear layer  y = act(x @ w + b)
# ---------------------------------------------------------------------------
def _linear_kernel(x_ref, w_ref, b_ref, o_ref, acc_ref, *, activation):
    @pl.when(pl.program_id(2) == 0)
    def _():
        acc_ref[...] = jnp.zeros_like(acc_ref)

    acc_ref[...] += jnp.dot(x_ref[...].astype(jnp.bfloat16), w_ref[...],
                            preferred_element_type=jnp.float32)

    @pl.when(pl.program_id(2) == pl.num_programs(2) - 1)
    def _():
        y = acc_ref[...] + b_ref[...]
        if activation == "relu":
            y = jnp.maximum(y, 0.0)
        o_ref[...] = y.astype(o_ref.dtype)


def pallas_linear(x, w, b=None, *, activation=None, out_dtype=jnp.float32,
                  tm=256, tn=256, tk=512):
    """x: (M, K) f32, w: (K, N) bf16, b: (N,) f32 or None -> (M, N)."""
    M, K = x.shape
    Kw, N = w.shape
    assert K == Kw
    # Effective tile sizes (use the full dim when it already fits one tile).
    tm_e = min(tm, _round_up(M, 8))
    tk_e = tk if K > tk else K
    tn_e = tn if N > tn else N
    Mp, Kp, Np = _round_up(M, tm_e), _round_up(K, tk_e), _round_up(N, tn_e)
    if (Mp, Kp) != (M, K):
        x = jnp.pad(x, ((0, Mp - M), (0, Kp - K)))
    if (Kp, Np) != (K, N):
        w = jnp.pad(w, ((0, Kp - K), (0, Np - N)))
    if b is None:
        bias = jnp.zeros((1, Np), jnp.float32)
    else:
        bias = jnp.pad(b.astype(jnp.float32).reshape(1, N), ((0, 0), (0, Np - N)))
    grid = (Mp // tm_e, Np // tn_e, Kp // tk_e)

    out = pl.pallas_call(
        functools.partial(_linear_kernel, activation=activation),
        out_shape=jax.ShapeDtypeStruct((Mp, Np), out_dtype),
        grid_spec=pltpu.PrefetchScalarGridSpec(
            num_scalar_prefetch=0,
            grid=grid,
            in_specs=[
                pl.BlockSpec((tm_e, tk_e), lambda i, j, k: (i, k)),
                pl.BlockSpec((tk_e, tn_e), lambda i, j, k: (k, j)),
                pl.BlockSpec((1, tn_e), lambda i, j, k: (0, j)),
            ],
            out_specs=pl.BlockSpec((tm_e, tn_e), lambda i, j, k: (i, j)),
            scratch_shapes=[pltpu.VMEM((tm_e, tn_e), jnp.float32)],
        ),
        compiler_params=pltpu.CompilerParams(
            dimension_semantics=("parallel", "parallel", "arbitrary"),
        ),
        cost_estimate=pl.CostEstimate(
            flops=2 * Mp * Np * Kp,
            transcendentals=0,
            bytes_accessed=(Mp * Kp * x.dtype.itemsize
                            + Kp * Np * w.dtype.itemsize
                            + Mp * Np * jnp.dtype(out_dtype).itemsize),
        ),
    )(x, w, bias)
    if (Mp, Np) != (M, N):
        out = out[:M, :N]
    return out


# ---------------------------------------------------------------------------
# Kernel 2: multi-head scaled-dot-product attention with masked softmax, fused
# with the W_o output projection, residual add and LayerNorm (AddNorm1).
# One batch element per (parallel) grid step; all heads handled inside;
# output is the lane-dense (S, num_hiddens) layout.
# ---------------------------------------------------------------------------
def _attn_block_kernel(vl_ref, qkv_ref, x_ref, wo_ref, bo_ref, g_ref, bt_ref,
                       o_ref, *, num_heads, head_dim):
    b = pl.program_id(0)
    vl = vl_ref[b]                                    # int32 valid length
    x = qkv_ref[0]                                    # (S, 3*num_hiddens) f32
    seq = x.shape[0]
    nh = num_heads * head_dim

    # Key-position mask computed once (int32 compare, no float casts).
    col = lax.broadcasted_iota(jnp.int32, (seq, seq), 1)
    keep = col < vl

    outs = []
    for h in range(num_heads):                        # static unroll over heads
        q = x[:, h * head_dim:(h + 1) * head_dim].astype(jnp.bfloat16)
        k = x[:, nh + h * head_dim:nh + (h + 1) * head_dim].astype(jnp.bfloat16)
        v = x[:, 2 * nh + h * head_dim:2 * nh + (h + 1) * head_dim].astype(jnp.bfloat16)

        # scores = q @ k^T (contraction on last dims; 1/sqrt(d_h) is already
        # folded into W_q).
        s = lax.dot_general(q, k, (((1,), (1,)), ((), ())),
                            preferred_element_type=jnp.float32)       # (S, S)
        s = jnp.where(keep, s, jnp.float32(-1e6))
        s = s - jnp.max(s, axis=-1, keepdims=True)
        p = jnp.exp(s)
        p = p * pl.reciprocal(jnp.sum(p, axis=-1, keepdims=True), approx=True)
        # TODO(synk): dropout on the attention weights is identity (eval mode).
        outs.append(jnp.dot(p.astype(jnp.bfloat16), v,
                            preferred_element_type=jnp.float32))      # (S, Dh)

    attn = jnp.concatenate(outs, axis=-1)                             # (S, NH)

    # Fused W_o projection + bias + residual add + LayerNorm (AddNorm1).
    proj = jnp.dot(attn.astype(jnp.bfloat16), wo_ref[...],
                   preferred_element_type=jnp.float32) + bo_ref[...]
    s2 = proj + x_ref[0]
    mean = jnp.mean(s2, axis=-1, keepdims=True)
    c = s2 - mean
    var = jnp.mean(c * c, axis=-1, keepdims=True)
    inv = lax.rsqrt(var + 1e-5)
    o_ref[0] = (c * inv * g_ref[...] + bt_ref[...]).astype(o_ref.dtype)


def pallas_attention_block(qkv, x, valid_lens, w_o, b_o, gamma, beta, num_heads):
    """qkv: (B,S,3D) f32, x: (B,S,D) residual, valid_lens: (B,) -> (B,S,D)."""
    B, S, three_nh = qkv.shape
    nh = three_nh // 3
    head_dim = nh // num_heads
    D = x.shape[-1]
    assert D == nh
    kernel = functools.partial(_attn_block_kernel, num_heads=num_heads,
                               head_dim=head_dim)
    grid_spec = pltpu.PrefetchScalarGridSpec(
        num_scalar_prefetch=1,
        grid=(B,),
        in_specs=[
            pl.BlockSpec((1, S, three_nh), lambda b, vl: (b, 0, 0)),
            pl.BlockSpec((1, S, D), lambda b, vl: (b, 0, 0)),
            pl.BlockSpec((D, D), lambda b, vl: (0, 0)),   # resident across grid
            pl.BlockSpec((1, D), lambda b, vl: (0, 0)),
            pl.BlockSpec((1, D), lambda b, vl: (0, 0)),
            pl.BlockSpec((1, D), lambda b, vl: (0, 0)),
        ],
        out_specs=pl.BlockSpec((1, S, D), lambda b, vl: (b, 0, 0)),
    )
    return pl.pallas_call(
        kernel,
        out_shape=jax.ShapeDtypeStruct((B, S, D), jnp.float32),
        grid_spec=grid_spec,
        compiler_params=pltpu.CompilerParams(
            dimension_semantics=("parallel",)),   # batch axis can shard across TCs
    )(valid_lens.astype(jnp.int32), qkv, x, w_o,
      b_o.astype(jnp.float32).reshape(1, D),
      gamma.astype(jnp.float32).reshape(1, D),
      beta.astype(jnp.float32).reshape(1, D))


# ---------------------------------------------------------------------------
# Kernel 3: tiled matmul fused with bias + residual add + LayerNorm (FFN2 +
# AddNorm2).  Requires the full output width N in a single tile.
# ---------------------------------------------------------------------------
def _linear_addln_kernel(x_ref, w_ref, b_ref, r_ref, g_ref, bt_ref, o_ref,
                         acc_ref):
    @pl.when(pl.program_id(1) == 0)
    def _():
        acc_ref[...] = jnp.zeros_like(acc_ref)

    acc_ref[...] += jnp.dot(x_ref[...].astype(jnp.bfloat16), w_ref[...],
                            preferred_element_type=jnp.float32)

    @pl.when(pl.program_id(1) == pl.num_programs(1) - 1)
    def _():
        s = acc_ref[...] + b_ref[...] + r_ref[...]
        mean = jnp.mean(s, axis=-1, keepdims=True)
        c = s - mean
        var = jnp.mean(c * c, axis=-1, keepdims=True)
        inv = lax.rsqrt(var + 1e-5)
        o_ref[...] = (c * inv * g_ref[...] + bt_ref[...]).astype(o_ref.dtype)


def pallas_linear_addnorm(x, w, b, residual, gamma, beta, *, tm=256, tk=512,
                          max_fused_n=2048, out_dtype=jnp.float32):
    """LayerNorm(residual + (x @ w + b)); x:(M,K) f32, w:(K,N) bf16."""
    M, K = x.shape
    Kw, N = w.shape
    assert K == Kw and residual.shape == (M, N)
    if N > max_fused_n:   # LayerNorm needs the whole row in one tile
        y = pallas_linear(x, w, b, out_dtype=out_dtype, tm=tm, tk=tk)
        return pallas_add_layernorm(residual, y, gamma, beta)

    tm_e = min(tm, _round_up(M, 8))
    tk_e = tk if K > tk else K
    Mp, Kp = _round_up(M, tm_e), _round_up(K, tk_e)
    if (Mp, Kp) != (M, K):
        x = jnp.pad(x, ((0, Mp - M), (0, Kp - K)))
    if Kp != K:
        w = jnp.pad(w, ((0, Kp - K), (0, 0)))
    r = residual if Mp == M else jnp.pad(residual, ((0, Mp - M), (0, 0)))
    bias = (jnp.zeros((1, N), jnp.float32) if b is None
            else b.astype(jnp.float32).reshape(1, N))
    g = gamma.astype(jnp.float32).reshape(1, N)
    bt = beta.astype(jnp.float32).reshape(1, N)
    grid = (Mp // tm_e, Kp // tk_e)

    out = pl.pallas_call(
        _linear_addln_kernel,
        out_shape=jax.ShapeDtypeStruct((Mp, N), out_dtype),
        grid_spec=pltpu.PrefetchScalarGridSpec(
            num_scalar_prefetch=0,
            grid=grid,
            in_specs=[
                pl.BlockSpec((tm_e, tk_e), lambda i, k: (i, k)),
                pl.BlockSpec((tk_e, N), lambda i, k: (k, 0)),
                pl.BlockSpec((1, N), lambda i, k: (0, 0)),
                pl.BlockSpec((tm_e, N), lambda i, k: (i, 0)),
                pl.BlockSpec((1, N), lambda i, k: (0, 0)),
                pl.BlockSpec((1, N), lambda i, k: (0, 0)),
            ],
            out_specs=pl.BlockSpec((tm_e, N), lambda i, k: (i, 0)),
            scratch_shapes=[pltpu.VMEM((tm_e, N), jnp.float32)],
        ),
        compiler_params=pltpu.CompilerParams(
            dimension_semantics=("parallel", "arbitrary")),
        cost_estimate=pl.CostEstimate(
            flops=2 * Mp * N * Kp,
            transcendentals=0,
            bytes_accessed=(Mp * Kp * 4 + Kp * N * 2 + 2 * Mp * N * 4)),
    )(x, w, bias, r, g, bt)
    return out[:M] if Mp != M else out


# ---------------------------------------------------------------------------
# Kernel 4 (fallback only): fused residual add + LayerNorm
# ---------------------------------------------------------------------------
def _add_ln_kernel(x_ref, y_ref, g_ref, b_ref, o_ref):
    s = x_ref[...] + y_ref[...]
    mean = jnp.mean(s, axis=-1, keepdims=True)
    c = s - mean
    var = jnp.mean(c * c, axis=-1, keepdims=True)
    inv = lax.rsqrt(var + 1e-5)
    o_ref[...] = (c * inv * g_ref[...] + b_ref[...]).astype(o_ref.dtype)


def pallas_add_layernorm(x, y, gamma, beta, *, tr=256):
    M, D = x.shape
    tr_e = min(tr, _round_up(M, 8))
    Mp = _round_up(M, tr_e)
    if Mp != M:
        x = jnp.pad(x, ((0, Mp - M), (0, 0)))
        y = jnp.pad(y, ((0, Mp - M), (0, 0)))
    g = gamma.astype(jnp.float32).reshape(1, D)
    b = beta.astype(jnp.float32).reshape(1, D)
    out = pl.pallas_call(
        _add_ln_kernel,
        out_shape=jax.ShapeDtypeStruct((Mp, D), jnp.float32),
        grid=(Mp // tr_e,),
        in_specs=[
            pl.BlockSpec((tr_e, D), lambda i: (i, 0)),
            pl.BlockSpec((tr_e, D), lambda i: (i, 0)),
            pl.BlockSpec((1, D), lambda i: (0, 0)),
            pl.BlockSpec((1, D), lambda i: (0, 0)),
        ],
        out_specs=pl.BlockSpec((tr_e, D), lambda i: (i, 0)),
        compiler_params=pltpu.CompilerParams(
            dimension_semantics=("parallel",)),
    )(x, y, g, b)
    return out[:M] if Mp != M else out


# ---------------------------------------------------------------------------
# BERT encoder forward (Pallas-backed)
# ---------------------------------------------------------------------------
def encoder_block(p, x, valid_lens, num_heads):
    B, S, D = x.shape
    x2 = x.reshape(B * S, D)
    # Fused QKV projection (scale folded into W_q at param-prep time).
    qkv = pallas_linear(x2, p["w_qkv"], p["b_qkv"])                    # (B*S, 3D)
    # Attention + W_o + AddNorm1 fused in one kernel.
    y = pallas_attention_block(qkv.reshape(B, S, 3 * D), x, valid_lens,
                               p["w_o"], p["b_o"], p["ln1_g"], p["ln1_b"],
                               num_heads)                              # (B, S, D)
    y2 = y.reshape(B * S, D)
    h = pallas_linear(y2, p["w_ffn1"], p["b_ffn1"], activation="relu")
    # FFN2 + AddNorm2 fused in one kernel.
    z = pallas_linear_addnorm(h, p["w_ffn2"], p["b_ffn2"], y2,
                              p["ln2_g"], p["ln2_b"])
    return z.reshape(B, S, D)


def bert_encoder_forward(params, tokens, segments, valid_lens, *, num_heads):
    B, S = tokens.shape
    # TODO(synk): embedding gathers stay in XLA (no clean Pallas gather win here).
    y = (params["tok_emb"][tokens] + params["seg_emb"][segments]
         + params["pos_emb"][:, :S, :])
    if valid_lens is None:
        valid_lens = jnp.full((B,), S, jnp.int32)
    for blk in params["blocks"]:
        y = encoder_block(blk, y, valid_lens, num_heads)
    return y


# ---------------------------------------------------------------------------
# Pure-JAX reference (same prepared params / same bf16 matmul casts)
# ---------------------------------------------------------------------------
def _ref_linear(x, w, b, activation=None):
    y = jnp.dot(x.astype(jnp.bfloat16), w, preferred_element_type=jnp.float32) + b
    if activation == "relu":
        y = jnp.maximum(y, 0.0)
    return y


def _ref_attention(qkv, valid_lens, num_heads):
    B, S, three_nh = qkv.shape
    nh = three_nh // 3
    dh = nh // num_heads

    def split(x):
        return x.reshape(B, S, num_heads, dh).transpose(0, 2, 1, 3).astype(jnp.bfloat16)

    q = split(qkv[..., :nh])
    k = split(qkv[..., nh:2 * nh])
    v = split(qkv[..., 2 * nh:])
    s = jnp.einsum("bhqd,bhkd->bhqk", q, k, preferred_element_type=jnp.float32)
    col = jnp.arange(S, dtype=jnp.int32)
    keep = col[None, None, None, :] < valid_lens[:, None, None, None]
    s = jnp.where(keep, s, -1e6)
    p = jax.nn.softmax(s, axis=-1)
    o = jnp.einsum("bhqk,bhkd->bhqd", p.astype(jnp.bfloat16), v,
                   preferred_element_type=jnp.float32)
    return o.transpose(0, 2, 1, 3).reshape(B, S, nh)


def _ref_add_layernorm(x, y, g, b):
    s = x + y
    mean = jnp.mean(s, axis=-1, keepdims=True)
    var = jnp.mean((s - mean) ** 2, axis=-1, keepdims=True)
    return (s - mean) / jnp.sqrt(var + 1e-5) * g + b


def _ref_encoder_block(p, x, valid_lens, num_heads):
    B, S, D = x.shape
    x2 = x.reshape(B * S, D)
    qkv = _ref_linear(x2, p["w_qkv"], p["b_qkv"])
    attn = _ref_attention(qkv.reshape(B, S, 3 * D), valid_lens, num_heads)
    attn_proj = _ref_linear(attn.reshape(B * S, D), p["w_o"], p["b_o"])
    y = _ref_add_layernorm(x2, attn_proj, p["ln1_g"], p["ln1_b"])
    h = _ref_linear(y, p["w_ffn1"], p["b_ffn1"], activation="relu")
    ffn = _ref_linear(h, p["w_ffn2"], p["b_ffn2"])
    z = _ref_add_layernorm(y, ffn, p["ln2_g"], p["ln2_b"])
    return z.reshape(B, S, D)


def reference_forward(params, tokens, segments, valid_lens, num_heads):
    B, S = tokens.shape
    y = (params["tok_emb"][tokens] + params["seg_emb"][segments]
         + params["pos_emb"][:, :S, :])
    for blk in params["blocks"]:
        y = _ref_encoder_block(blk, y, valid_lens, num_heads)
    return y


# ---------------------------------------------------------------------------
# Parameter init (Linear weights stored as (in, out); fused QKV with the
# 1/sqrt(head_dim) attention scale folded into W_q; weights kept in bf16).
# ---------------------------------------------------------------------------
def init_params(key, *, vocab_size, num_hiddens, ffn_num_hiddens, num_heads,
                num_layers, max_len):
    D = num_hiddens
    dh = D // num_heads
    scale = 1.0 / math.sqrt(dh)
    keys = jax.random.split(key, 3 + num_layers)
    params = {
        "tok_emb": 0.1 * jax.random.normal(keys[0], (vocab_size, D), jnp.float32),
        "seg_emb": 0.1 * jax.random.normal(keys[1], (2, D), jnp.float32),
        "pos_emb": 0.1 * jax.random.normal(keys[2], (1, max_len, D), jnp.float32),
        "blocks": [],
    }

    def uni(k, shape, fan_in):
        bound = 1.0 / math.sqrt(fan_in)
        return jax.random.uniform(k, shape, jnp.float32, -bound, bound)

    for l in range(num_layers):
        ks = jax.random.split(keys[3 + l], 16)
        W_q, b_q = uni(ks[0], (D, D), D), uni(ks[1], (D,), D)
        W_k, b_k = uni(ks[2], (D, D), D), uni(ks[3], (D,), D)
        W_v, b_v = uni(ks[4], (D, D), D), uni(ks[5], (D,), D)
        W_o, b_o = uni(ks[6], (D, D), D), uni(ks[7], (D,), D)
        W1, b1 = uni(ks[8], (D, ffn_num_hiddens), D), uni(ks[9], (ffn_num_hiddens,), D)
        W2, b2 = (uni(ks[10], (ffn_num_hiddens, D), ffn_num_hiddens),
                  uni(ks[11], (D,), ffn_num_hiddens))
        w_qkv = jnp.concatenate([W_q * scale, W_k, W_v], axis=1)
        b_qkv = jnp.concatenate([b_q * scale, b_k, b_v], axis=0)
        params["blocks"].append({
            "w_qkv": w_qkv.astype(jnp.bfloat16), "b_qkv": b_qkv,
            "w_o": W_o.astype(jnp.bfloat16), "b_o": b_o,
            "w_ffn1": W1.astype(jnp.bfloat16), "b_ffn1": b1,
            "w_ffn2": W2.astype(jnp.bfloat16), "b_ffn2": b2,
            "ln1_g": 1.0 + 0.1 * jax.random.normal(ks[12], (D,), jnp.float32),
            "ln1_b": 0.1 * jax.random.normal(ks[13], (D,), jnp.float32),
            "ln2_g": 1.0 + 0.1 * jax.random.normal(ks[14], (D,), jnp.float32),
            "ln2_b": 0.1 * jax.random.normal(ks[15], (D,), jnp.float32),
        })
    return params


# ---------------------------------------------------------------------------
if __name__ == "__main__":
    vocab_size = 128
    num_hiddens = 32        # D ; head_dim = 8
    ffn_num_hiddens = 64
    num_heads = 4
    num_layers = 2
    max_len = 64
    batch, seq_len = 2, 8

    root = jax.random.PRNGKey(0)
    kp, kt, ks = jax.random.split(root, 3)
    params = init_params(kp, vocab_size=vocab_size, num_hiddens=num_hiddens,
                         ffn_num_hiddens=ffn_num_hiddens, num_heads=num_heads,
                         num_layers=num_layers, max_len=max_len)
    tokens = jax.random.randint(kt, (batch, seq_len), 0, vocab_size, jnp.int32)
    segments = jax.random.randint(ks, (batch, seq_len), 0, 2, jnp.int32)
    valid_lens = jnp.array([3, 6], dtype=jnp.int32)

    fwd = jax.jit(functools.partial(bert_encoder_forward, num_heads=num_heads))
    out = jax.block_until_ready(fwd(params, tokens, segments, valid_lens))

    ref = reference_forward(params, tokens, segments, valid_lens, num_heads)
    assert out.shape == (batch, seq_len, num_hiddens), out.shape
    max_diff = float(jnp.max(jnp.abs(out - ref)))
    assert max_diff < 1e-2, f"mismatch vs reference, max abs diff = {max_diff}"
    print("KERNEL_OK")
</pallas_src>

<mosaic_0001>
module attributes {stable_mosaic.version = 11 : i64} {
  func.func @_linear_kernel(%arg0: i32, %arg1: i32, %arg2: i32, %arg3: memref<16x32xf32, #tpu.memory_space<vmem>>, %arg4: memref<32x64xbf16, #tpu.memory_space<vmem>>, %arg5: memref<1x64xf32, #tpu.memory_space<vmem>>, %arg6: memref<16x64xf32, #tpu.memory_space<vmem>>, %arg7: memref<16x64xf32, #tpu.memory_space<vmem>>) attributes {dimension_semantics = [#tpu.dimension_semantics<parallel>, #tpu.dimension_semantics<parallel>, #tpu.dimension_semantics<arbitrary>], iteration_bounds = array<i64: 1, 1, 1>, scalar_prefetch = 0 : i64, scratch_operands = 1 : i64, tpu.core_type = #tpu.core_type<tc>, window_params = [{transform_indices = @transform_0, window_bounds = array<i64: 16, 32>}, {transform_indices = @transform_1, window_bounds = array<i64: 32, 64>}, {transform_indices = @transform_2, window_bounds = array<i64: 1, 64>}, {transform_indices = @transform_3, window_bounds = array<i64: 16, 64>}]} {
    %c0_i32 = arith.constant 0 : i32
    %0 = arith.cmpi eq, %arg2, %c0_i32 : i32
    %1 = arith.extui %0 : i1 to i32
    %c0_i32_0 = arith.constant 0 : i32
    %2 = arith.cmpi ne, %1, %c0_i32_0 : i32
    scf.if %2 {
      %cst_10 = arith.constant 0.000000e+00 : f32
      %13 = vector.broadcast %cst_10 : f32 to vector<16x64xf32>
      %c0_11 = arith.constant 0 : index
      %c0_12 = arith.constant 0 : index
      %14 = vector.load %arg7[%c0_11, %c0_12] : memref<16x64xf32, #tpu.memory_space<vmem>>, vector<16x64xf32>
      tpu.vector_store %arg7[%c0_11, %c0_12], %13 {strides = array<i32>} : memref<16x64xf32, #tpu.memory_space<vmem>>, vector<16x64xf32>,
    } else {
    }
    %c0 = arith.constant 0 : index
    %c0_1 = arith.constant 0 : index
    %3 = vector.load %arg7[%c0, %c0_1] : memref<16x64xf32, #tpu.memory_space<vmem>>, vector<16x64xf32>
    %c0_2 = arith.constant 0 : index
    %c0_3 = arith.constant 0 : index
    %4 = vector.load %arg3[%c0_2, %c0_3] : memref<16x32xf32, #tpu.memory_space<vmem>>, vector<16x32xf32>
    %5 = arith.truncf %4 : vector<16x32xf32> to vector<16x32xbf16>
    %c0_4 = arith.constant 0 : index
    %c0_5 = arith.constant 0 : index
    %6 = vector.load %arg4[%c0_4, %c0_5] : memref<32x64xbf16, #tpu.memory_space<vmem>>, vector<32x64xbf16>
    %cst = arith.constant dense<0.000000e+00> : vector<16x64xf32>
    %7 = tpu.matmul %5, %6, %cst {dimension_numbers = #tpu.dot_dimension_numbers<[1], [0], [0], [1], [0, 0, 1, 1], [], []>} : vector<16x32xbf16>, vector<32x64xbf16>, vector<16x64xf32> -> vector<16x64xf32>
    %8 = arith.addf %3, %7 : vector<16x64xf32>
    %c0_6 = arith.constant 0 : index
    %c0_7 = arith.constant 0 : index
    %9 = vector.load %arg7[%c0_6, %c0_7] : memref<16x64xf32, #tpu.memory_space<vmem>>, vector<16x64xf32>
    tpu.vector_store %arg7[%c0_6, %c0_7], %8 {strides = array<i32>} : memref<16x64xf32, #tpu.memory_space<vmem>>, vector<16x64xf32>,
    %c0_i32_8 = arith.constant 0 : i32
    %10 = arith.cmpi eq, %arg2, %c0_i32_8 : i32
    %11 = arith.extui %10 : i1 to i32
    %c0_i32_9 = arith.constant 0 : i32
    %12 = arith.cmpi ne, %11, %c0_i32_9 : i32
    scf.if %12 {
      %c0_10 = arith.constant 0 : index
      %c0_11 = arith.constant 0 : index
      %13 = vector.load %arg7[%c0_10, %c0_11] : memref<16x64xf32, #tpu.memory_space<vmem>>, vector<16x64xf32>
      %c0_12 = arith.constant 0 : index
      %c0_13 = arith.constant 0 : index
      %14 = vector.load %arg5[%c0_12, %c0_13] : memref<1x64xf32, #tpu.memory_space<vmem>>, vector<1x64xf32>
      %15 = vector.broadcast %14 : vector<1x64xf32> to vector<16x64xf32>
      %16 = arith.addf %13, %15 : vector<16x64xf32>
      %cst_14 = arith.constant 0.000000e+00 : f32
      %17 = vector.broadcast %cst_14 : f32 to vector<16x64xf32>
      %18 = arith.maximumf %16, %17 : vector<16x64xf32>
      %c0_15 = arith.constant 0 : index
      %c0_16 = arith.constant 0 : index
      %19 = vector.load %arg6[%c0_15, %c0_16] : memref<16x64xf32, #tpu.memory_space<vmem>>, vector<16x64xf32>
      tpu.vector_store %arg6[%c0_15, %c0_16], %18 {strides = array<i32>} : memref<16x64xf32, #tpu.memory_space<vmem>>, vector<16x64xf32>,
    } else {
    }
    return
  }
  func.func @transform_0(%arg0: i32, %arg1: i32, %arg2: i32) -> (i32, i32) {
    %c0_i32 = arith.constant 0 : i32
    return %arg0, %arg2 : i32, i32
  }
  func.func @transform_1(%arg0: i32, %arg1: i32, %arg2: i32) -> (i32, i32) {
    %c0_i32 = arith.constant 0 : i32
    return %arg2, %arg1 : i32, i32
  }
  func.func @transform_2(%arg0: i32, %arg1: i32, %arg2: i32) -> (i32, i32) {
    %c0_i32 = arith.constant 0 : i32
    %c0_i32_0 = arith.constant 0 : i32
    return %c0_i32, %arg1 : i32, i32
  }
  func.func @transform_3(%arg0: i32, %arg1: i32, %arg2: i32) -> (i32, i32) {
    %c0_i32 = arith.constant 0 : i32
    return %arg0, %arg1 : i32, i32
  }
}

module attributes {stable_mosaic.version = 11 : i64} {
  func.func @_linear_kernel(%arg0: i32, %arg1: i32, %arg2: i32, %arg3: memref<16x32xf32, #tpu.memory_space<vmem>>, %arg4: memref<32x96xbf16, #tpu.memory_space<vmem>>, %arg5: memref<1x96xf32, #tpu.memory_space<vmem>>, %arg6: memref<16x96xf32, #tpu.memory_space<vmem>>, %arg7: memref<16x96xf32, #tpu.memory_space<vmem>>) attributes {dimension_semantics = [#tpu.dimension_semantics<parallel>, #tpu.dimension_semantics<parallel>, #tpu.dimension_semantics<arbitrary>], iteration_bounds = array<i64: 1, 1, 1>, scalar_prefetch = 0 : i64, scratch_operands = 1 : i64, tpu.core_type = #tpu.core_type<tc>, window_params = [{transform_indices = @transform_0, window_bounds = array<i64: 16, 32>}, {transform_indices = @transform_1, window_bounds = array<i64: 32, 96>}, {transform_indices = @transform_2, window_bounds = array<i64: 1, 96>}, {transform_indices = @transform_3, window_bounds = array<i64: 16, 96>}]} {
    %c0_i32 = arith.constant 0 : i32
    %0 = arith.cmpi eq, %arg2, %c0_i32 : i32
    %1 = arith.extui %0 : i1 to i32
    %c0_i32_0 = arith.constant 0 : i32
    %2 = arith.cmpi ne, %1, %c0_i32_0 : i32
    scf.if %2 {
      %cst_10 = arith.constant 0.000000e+00 : f32
      %13 = vector.broadcast %cst_10 : f32 to vector<16x96xf32>
      %c0_11 = arith.constant 0 : index
      %c0_12 = arith.constant 0 : index
      %14 = vector.load %arg7[%c0_11, %c0_12] : memref<16x96xf32, #tpu.memory_space<vmem>>, vector<16x96xf32>
      tpu.vector_store %arg7[%c0_11, %c0_12], %13 {strides = array<i32>} : memref<16x96xf32, #tpu.memory_space<vmem>>, vector<16x96xf32>,
    } else {
    }
    %c0 = arith.constant 0 : index
    %c0_1 = arith.constant 0 : index
    %3 = vector.load %arg7[%c0, %c0_1] : memref<16x96xf32, #tpu.memory_space<vmem>>, vector<16x96xf32>
    %c0_2 = arith.constant 0 : index
    %c0_3 = arith.constant 0 : index
    %4 = vector.load %arg3[%c0_2, %c0_3] : memref<16x32xf32, #tpu.memory_space<vmem>>, vector<16x32xf32>
    %5 = arith.truncf %4 : vector<16x32xf32> to vector<16x32xbf16>
    %c0_4 = arith.constant 0 : index
    %c0_5 = arith.constant 0 : index
    %6 = vector.load %arg4[%c0_4, %c0_5] : memref<32x96xbf16, #tpu.memory_space<vmem>>, vector<32x96xbf16>
    %cst = arith.constant dense<0.000000e+00> : vector<16x96xf32>
    %7 = tpu.matmul %5, %6, %cst {dimension_numbers = #tpu.dot_dimension_numbers<[1], [0], [0], [1], [0, 0, 1, 1], [], []>} : vector<16x32xbf16>, vector<32x96xbf16>, vector<16x96xf32> -> vector<16x96xf32>
    %8 = arith.addf %3, %7 : vector<16x96xf32>
    %c0_6 = arith.constant 0 : index
    %c0_7 = arith.constant 0 : index
    %9 = vector.load %arg7[%c0_6, %c0_7] : memref<16x96xf32, #tpu.memory_space<vmem>>, vector<16x96xf32>
    tpu.vector_store %arg7[%c0_6, %c0_7], %8 {strides = array<i32>} : memref<16x96xf32, #tpu.memory_space<vmem>>, vector<16x96xf32>,
    %c0_i32_8 = arith.constant 0 : i32
    %10 = arith.cmpi eq, %arg2, %c0_i32_8 : i32
    %11 = arith.extui %10 : i1 to i32
    %c0_i32_9 = arith.constant 0 : i32
    %12 = arith.cmpi ne, %11, %c0_i32_9 : i32
    scf.if %12 {
      %c0_10 = arith.constant 0 : index
      %c0_11 = arith.constant 0 : index
      %13 = vector.load %arg7[%c0_10, %c0_11] : memref<16x96xf32, #tpu.memory_space<vmem>>, vector<16x96xf32>
      %c0_12 = arith.constant 0 : index
      %c0_13 = arith.constant 0 : index
      %14 = vector.load %arg5[%c0_12, %c0_13] : memref<1x96xf32, #tpu.memory_space<vmem>>, vector<1x96xf32>
      %15 = vector.broadcast %14 : vector<1x96xf32> to vector<16x96xf32>
      %16 = arith.addf %13, %15 : vector<16x96xf32>
      %c0_14 = arith.constant 0 : index
      %c0_15 = arith.constant 0 : index
      %17 = vector.load %arg6[%c0_14, %c0_15] : memref<16x96xf32, #tpu.memory_space<vmem>>, vector<16x96xf32>
      tpu.vector_store %arg6[%c0_14, %c0_15], %16 {strides = array<i32>} : memref<16x96xf32, #tpu.memory_space<vmem>>, vector<16x96xf32>,
    } else {
    }
    return
  }
  func.func @transform_0(%arg0: i32, %arg1: i32, %arg2: i32) -> (i32, i32) {
    %c0_i32 = arith.constant 0 : i32
    return %arg0, %arg2 : i32, i32
  }
  func.func @transform_1(%arg0: i32, %arg1: i32, %arg2: i32) -> (i32, i32) {
    %c0_i32 = arith.constant 0 : i32
    return %arg2, %arg1 : i32, i32
  }
  func.func @transform_2(%arg0: i32, %arg1: i32, %arg2: i32) -> (i32, i32) {
    %c0_i32 = arith.constant 0 : i32
    %c0_i32_0 = arith.constant 0 : i32
    return %c0_i32, %arg1 : i32, i32
  }
  func.func @transform_3(%arg0: i32, %arg1: i32, %arg2: i32) -> (i32, i32) {
    %c0_i32 = arith.constant 0 : i32
    return %arg0, %arg1 : i32, i32
  }
}

module attributes {stable_mosaic.version = 11 : i64} {
  func.func @_attn_block_kernel(%arg0: i32, %arg1: memref<2xi32, #tpu.memory_space<smem>>, %arg2: memref<1x8x96xf32, #tpu.memory_space<vmem>>, %arg3: memref<1x8x32xf32, #tpu.memory_space<vmem>>, %arg4: memref<32x32xbf16, #tpu.memory_space<vmem>>, %arg5: memref<1x32xf32, #tpu.memory_space<vmem>>, %arg6: memref<1x32xf32, #tpu.memory_space<vmem>>, %arg7: memref<1x32xf32, #tpu.memory_space<vmem>>, %arg8: memref<1x8x32xf32, #tpu.memory_space<vmem>>) attributes {dimension_semantics = [#tpu.dimension_semantics<parallel>], iteration_bounds = array<i64: 2>, scalar_prefetch = 1 : i64, scratch_operands = 0 : i64, tpu.core_type = #tpu.core_type<tc>, window_params = [{transform_indices = @transform_0, window_bounds = array<i64: 1, 8, 96>}, {transform_indices = @transform_1, window_bounds = array<i64: 1, 8, 32>}, {pipeline_mode = #tpu.pipeline_mode<synchronous>, transform_indices = @transform_2, window_bounds = array<i64: 32, 32>}, {pipeline_mode = #tpu.pipeline_mode<synchronous>, transform_indices = @transform_3, window_bounds = array<i64: 1, 32>}, {pipeline_mode = #tpu.pipeline_mode<synchronous>, transform_indices = @transform_4, window_bounds = array<i64: 1, 32>}, {pipeline_mode = #tpu.pipeline_mode<synchronous>, transform_indices = @transform_5, window_bounds = array<i64: 1, 32>}, {transform_indices = @transform_6, window_bounds = array<i64: 1, 8, 32>}]} {
    %0 = arith.index_cast %arg0 : i32 to index
    %1 = memref.load %arg1[%0] : memref<2xi32, #tpu.memory_space<smem>>
    %c0 = arith.constant 0 : index
    %c0_0 = arith.constant 0 : index
    %c0_1 = arith.constant 0 : index
    %2 = vector.load %arg2[%c0, %c0_0, %c0_1] : memref<1x8x96xf32, #tpu.memory_space<vmem>>, vector<1x8x96xf32>
    %3 = vector.shape_cast %2 : vector<1x8x96xf32> to vector<8x96xf32>
    %4 = tpu.iota {dimensions = array<i32: 1>} : vector<8x8xi32>
    %5 = vector.broadcast %1 : i32 to vector<8x8xi32>
    %6 = arith.cmpi slt, %4, %5 : vector<8x8xi32>
    %7 = vector.extract_strided_slice %3 {offsets = [0, 0], sizes = [8, 8], strides = [1, 1]} : vector<8x96xf32> to vector<8x8xf32>
    %8 = arith.truncf %7 : vector<8x8xf32> to vector<8x8xbf16>
    %9 = vector.extract_strided_slice %3 {offsets = [0, 32], sizes = [8, 8], strides = [1, 1]} : vector<8x96xf32> to vector<8x8xf32>
    %10 = arith.truncf %9 : vector<8x8xf32> to vector<8x8xbf16>
    %11 = vector.extract_strided_slice %3 {offsets = [0, 64], sizes = [8, 8], strides = [1, 1]} : vector<8x96xf32> to vector<8x8xf32>
    %12 = arith.truncf %11 : vector<8x8xf32> to vector<8x8xbf16>
    %cst = arith.constant dense<0.000000e+00> : vector<8x8xf32>
    %13 = tpu.matmul %8, %10, %cst {dimension_numbers = #tpu.dot_dimension_numbers<[1], [1], [0], [0], [0, 0, 1, 0], [], []>} : vector<8x8xbf16>, vector<8x8xbf16>, vector<8x8xf32> -> vector<8x8xf32>
    %cst_2 = arith.constant -1.000000e+06 : f32
    %14 = vector.broadcast %cst_2 : f32 to vector<8x8xf32>
    %15 = arith.select %6, %13, %14 : vector<8x8xi1>, vector<8x8xf32>
    %cst_3 = arith.constant dense<0xFF800000> : vector<8xf32>
    %16 = vector.multi_reduction <maximumf>, %15, %cst_3 [1] : vector<8x8xf32> to vector<8xf32>
    %17 = vector.shape_cast %16 : vector<8xf32> to vector<8x1xf32>
    %18 = vector.broadcast %17 : vector<8x1xf32> to vector<8x8xf32>
    %19 = arith.subf %15, %18 : vector<8x8xf32>
    %20 = math.exp %19 : vector<8x8xf32>
    %cst_4 = arith.constant dense<0.000000e+00> : vector<8xf32>
    %21 = vector.multi_reduction <add>, %20, %cst_4 [1] : vector<8x8xf32> to vector<8xf32>
    %22 = vector.shape_cast %21 : vector<8xf32> to vector<8x1xf32>
    %23 = tpu.reciprocal %22 {approx = true} : vector<8x1xf32> -> vector<8x1xf32>
    %24 = vector.broadcast %23 : vector<8x1xf32> to vector<8x8xf32>
    %25 = arith.mulf %20, %24 : vector<8x8xf32>
    %26 = arith.truncf %25 : vector<8x8xf32> to vector<8x8xbf16>
    %cst_5 = arith.constant dense<0.000000e+00> : vector<8x8xf32>
    %27 = tpu.matmul %26, %12, %cst_5 {dimension_numbers = #tpu.dot_dimension_numbers<[1], [0], [0], [1], [0, 0, 1, 1], [], []>} : vector<8x8xbf16>, vector<8x8xbf16>, vector<8x8xf32> -> vector<8x8xf32>
    %28 = vector.extract_strided_slice %3 {offsets = [0, 8], sizes = [8, 8], strides = [1, 1]} : vector<8x96xf32> to vector<8x8xf32>
    %29 = arith.truncf %28 : vector<8x8xf32> to vector<8x8xbf16>
    %30 = vector.extract_strided_slice %3 {offsets = [0, 40], sizes = [8, 8], strides = [1, 1]} : vector<8x96xf32> to vector<8x8xf32>
    %31 = arith.truncf %30 : vector<8x8xf32> to vector<8x8xbf16>
    %32 = vector.extract_strided_slice %3 {offsets = [0, 72], sizes = [8, 8], strides = [1, 1]} : vector<8x96xf32> to vector<8x8xf32>
    %33 = arith.truncf %32 : vector<8x8xf32> to vector<8x8xbf16>
    %cst_6 = arith.constant dense<0.000000e+00> : vector<8x8xf32>
    %34 = tpu.matmul %29, %31, %cst_6 {dimension_numbers = #tpu.dot_dimension_numbers<[1], [1], [0], [0], [0, 0, 1, 0], [], []>} : vector<8x8xbf16>, vector<8x8xbf16>, vector<8x8xf32> -> vector<8x8xf32>
    %cst_7 = arith.constant -1.000000e+06 : f32
    %35 = vector.broadcast %cst_7 : f32 to vector<8x8xf32>
    %36 = arith.select %6, %34, %35 : vector<8x8xi1>, vector<8x8xf32>
    %cst_8 = arith.constant dense<0xFF800000> : vector<8xf32>
    %37 = vector.multi_reduction <maximumf>, %36, %cst_8 [1] : vector<8x8xf32> to vector<8xf32>
    %38 = vector.shape_cast %37 : vector<8xf32> to vector<8x1xf32>
    %39 = vector.broadcast %38 : vector<8x1xf32> to vector<8x8xf32>
    %40 = arith.subf %36, %39 : vector<8x8xf32>
    %41 = math.exp %40 : vector<8x8xf32>
    %cst_9 = arith.constant dense<0.000000e+00> : vector<8xf32>
    %42 = vector.multi_reduction <add>, %41, %cst_9 [1] : vector<8x8xf32> to vector<8xf32>
    %43 = vector.shape_cast %42 : vector<8xf32> to vector<8x1xf32>
    %44 = tpu.reciprocal %43 {approx = true} : vector<8x1xf32> -> vector<8x1xf32>
    %45 = vector.broadcast %44 : vector<8x1xf32> to vector<8x8xf32>
    %46 = arith.mulf %41, %45 : vector<8x8xf32>
    %47 = arith.truncf %46 : vector<8x8xf32> to vector<8x8xbf16>
    %cst_10 = arith.constant dense<0.000000e+00> : vector<8x8xf32>
    %48 = tpu.matmul %47, %33, %cst_10 {dimension_numbers = #tpu.dot_dimension_numbers<[1], [0], [0], [1], [0, 0, 1, 1], [], []>} : vector<8x8xbf16>, vector<8x8xbf16>, vector<8x8xf32> -> vector<8x8xf32>
    %49 = vector.extract_strided_slice %3 {offsets = [0, 16], sizes = [8, 8], strides = [1, 1]} : vector<8x96xf32> to vector<8x8xf32>
    %50 = arith.truncf %49 : vector<8x8xf32> to vector<8x8xbf16>
    %51 = vector.extract_strided_slice %3 {offsets = [0, 48], sizes = [8, 8], strides = [1, 1]} : vector<8x96xf32> to vector<8x8xf32>
    %52 = arith.truncf %51 : vector<8x8xf32> to vector<8x8xbf16>
    %53 = vector.extract_strided_slice %3 {offsets = [0, 80], sizes = [8, 8], strides = [1, 1]} : vector<8x96xf32> to vector<8x8xf32>
    %54 = arith.truncf %53 : vector<8x8xf32> to vector<8x8xbf16>
    %cst_11 = arith.constant dense<0.000000e+00> : vector<8x8xf32>
    %55 = tpu.matmul %50, %52, %cst_11 {dimension_numbers = #tpu.dot_dimension_numbers<[1], [1], [0], [0], [0, 0, 1, 0], [], []>} : vector<8x8xbf16>, vector<8x8xbf16>, vector<8x8xf32> -> vector<8x8xf32>
    %cst_12 = arith.constant -1.000000e+06 : f32
    %56 = vector.broadcast %cst_12 : f32 to vector<8x8xf32>
    %57 = arith.select %6, %55, %56 : vector<8x8xi1>, vector<8x8xf32>
    %cst_13 = arith.constant dense<0xFF800000> : vector<8xf32>
    %58 = vector.multi_reduction <maximumf>, %57, %cst_13 [1] : vector<8x8xf32> to vector<8xf32>
    %59 = vector.shape_cast %58 : vector<8xf32> to vector<8x1xf32>
    %60 = vector.broadcast %59 : vector<8x1xf32> to vector<8x8xf32>
    %61 = arith.subf %57, %60 : vector<8x8xf32>
    %62 = math.exp %61 : vector<8x8xf32>
    %cst_14 = arith.constant dense<0.000000e+00> : vector<8xf32>
    %63 = vector.multi_reduction <add>, %62, %cst_14 [1] : vector<8x8xf32> to vector<8xf32>
    %64 = vector.shape_cast %63 : vector<8xf32> to vector<8x1xf32>
    %65 = tpu.reciprocal %64 {approx = true} : vector<8x1xf32> -> vector<8x1xf32>
    %66 = vector.broadcast %65 : vector<8x1xf32> to vector<8x8xf32>
    %67 = arith.mulf %62, %66 : vector<8x8xf32>
    %68 = arith.truncf %67 : vector<8x8xf32> to vector<8x8xbf16>
    %cst_15 = arith.constant dense<0.000000e+00> : vector<8x8xf32>
    %69 = tpu.matmul %68, %54, %cst_15 {dimension_numbers = #tpu.dot_dimension_numbers<[1], [0], [0], [1], [0, 0, 1, 1], [], []>} : vector<8x8xbf16>, vector<8x8xbf16>, vector<8x8xf32> -> vector<8x8xf32>
    %70 = vector.extract_strided_slice %3 {offsets = [0, 24], sizes = [8, 8], strides = [1, 1]} : vector<8x96xf32> to vector<8x8xf32>
    %71 = arith.truncf %70 : vector<8x8xf32> to vector<8x8xbf16>
    %72 = vector.extract_strided_slice %3 {offsets = [0, 56], sizes = [8, 8], strides = [1, 1]} : vector<8x96xf32> to vector<8x8xf32>
    %73 = arith.truncf %72 : vector<8x8xf32> to vector<8x8xbf16>
    %74 = vector.extract_strided_slice %3 {offsets = [0, 88], sizes = [8, 8], strides = [1, 1]} : vector<8x96xf32> to vector<8x8xf32>
    %75 = arith.truncf %74 : vector<8x8xf32> to vector<8x8xbf16>
    %cst_16 = arith.constant dense<0.000000e+00> : vector<8x8xf32>
    %76 = tpu.matmul %71, %73, %cst_16 {dimension_numbers = #tpu.dot_dimension_numbers<[1], [1], [0], [0], [0, 0, 1, 0], [], []>} : vector<8x8xbf16>, vector<8x8xbf16>, vector<8x8xf32> -> vector<8x8xf32>
    %cst_17 = arith.constant -1.000000e+06 : f32
    %77 = vector.broadcast %cst_17 : f32 to vector<8x8xf32>
    %78 = arith.select %6, %76, %77 : vector<8x8xi1>, vector<8x8xf32>
    %cst_18 = arith.constant dense<0xFF800000> : vector<8xf32>
    %79 = vector.multi_reduction <maximumf>, %78, %cst_18 [1] : vector<8x8xf32> to vector<8xf32>
    %80 = vector.shape_cast %79 : vector<8xf32> to vector<8x1xf32>
    %81 = vector.broadcast %80 : vector<8x1xf32> to vector<8x8xf32>
    %82 = arith.subf %78, %81 : vector<8x8xf32>
    %83 = math.exp %82 : vector<8x8xf32>
    %cst_19 = arith.constant dense<0.000000e+00> : vector<8xf32>
    %84 = vector.multi_reduction <add>, %83, %cst_19 [1] : vector<8x8xf32> to vector<8xf32>
    %85 = vector.shape_cast %84 : vector<8xf32> to vector<8x1xf32>
    %86 = tpu.reciprocal %85 {approx = true} : vector<8x1xf32> -> vector<8x1xf32>
    %87 = vector.broadcast %86 : vector<8x1xf32> to vector<8x8xf32>
    %88 = arith.mulf %83, %87 : vector<8x8xf32>
    %89 = arith.truncf %88 : vector<8x8xf32> to vector<8x8xbf16>
    %cst_20 = arith.constant dense<0.000000e+00> : vector<8x8xf32>
    %90 = tpu.matmul %89, %75, %cst_20 {dimension_numbers = #tpu.dot_dimension_numbers<[1], [0], [0], [1], [0, 0, 1, 1], [], []>} : vector<8x8xbf16>, vector<8x8xbf16>, vector<8x8xf32> -> vector<8x8xf32>
    %91 = tpu.concatenate %27, %48, %69, %90 in 1 : vector<8x8xf32>, vector<8x8xf32>, vector<8x8xf32>, vector<8x8xf32> -> vector<8x32xf32>
    %92 = arith.truncf %91 : vector<8x32xf32> to vector<8x32xbf16>
    %c0_21 = arith.constant 0 : index
    %c0_22 = arith.constant 0 : index
    %93 = vector.load %arg4[%c0_21, %c0_22] : memref<32x32xbf16, #tpu.memory_space<vmem>>, vector<32x32xbf16>
    %cst_23 = arith.constant dense<0.000000e+00> : vector<8x32xf32>
    %94 = tpu.matmul %92, %93, %cst_23 {dimension_numbers = #tpu.dot_dimension_numbers<[1], [0], [0], [1], [0, 0, 1, 1], [], []>} : vector<8x32xbf16>, vector<32x32xbf16>, vector<8x32xf32> -> vector<8x32xf32>
    %c0_24 = arith.constant 0 : index
    %c0_25 = arith.constant 0 : index
    %95 = vector.load %arg5[%c0_24, %c0_25] : memref<1x32xf32, #tpu.memory_space<vmem>>, vector<1x32xf32>
    %96 = vector.broadcast %95 : vector<1x32xf32> to vector<8x32xf32>
    %97 = arith.addf %94, %96 : vector<8x32xf32>
    %c0_26 = arith.constant 0 : index
    %c0_27 = arith.constant 0 : index
    %c0_28 = arith.constant 0 : index
    %98 = vector.load %arg3[%c0_26, %c0_27, %c0_28] : memref<1x8x32xf32, #tpu.memory_space<vmem>>, vector<1x8x32xf32>
    %99 = vector.shape_cast %98 : vector<1x8x32xf32> to vector<8x32xf32>
    %100 = arith.addf %97, %99 : vector<8x32xf32>
    %cst_29 = arith.constant dense<0.000000e+00> : vector<8xf32>
    %101 = vector.multi_reduction <add>, %100, %cst_29 [1] : vector<8x32xf32> to vector<8xf32>
    %102 = vector.shape_cast %101 : vector<8xf32> to vector<8x1xf32>
    %cst_30 = arith.constant 3.200000e+01 : f32
    %103 = vector.broadcast %cst_30 : f32 to vector<8x1xf32>
    %104 = arith.divf %102, %103 : vector<8x1xf32>
    %105 = vector.broadcast %104 : vector<8x1xf32> to vector<8x32xf32>
    %106 = arith.subf %100, %105 : vector<8x32xf32>
    %107 = arith.mulf %106, %106 : vector<8x32xf32>
    %cst_31 = arith.constant dense<0.000000e+00> : vector<8xf32>
    %108 = vector.multi_reduction <add>, %107, %cst_31 [1] : vector<8x32xf32> to vector<8xf32>
    %109 = vector.shape_cast %108 : vector<8xf32> to vector<8x1xf32>
    %cst_32 = arith.constant 3.200000e+01 : f32
    %110 = vector.broadcast %cst_32 : f32 to vector<8x1xf32>
    %111 = arith.divf %109, %110 : vector<8x1xf32>
    %cst_33 = arith.constant 9.99999974E-6 : f32
    %112 = vector.broadcast %cst_33 : f32 to vector<8x1xf32>
    %113 = arith.addf %111, %112 : vector<8x1xf32>
    %114 = math.rsqrt %113 : vector<8x1xf32>
    %115 = vector.broadcast %114 : vector<8x1xf32> to vector<8x32xf32>
    %116 = arith.mulf %106, %115 : vector<8x32xf32>
    %c0_34 = arith.constant 0 : index
    %c0_35 = arith.constant 0 : index
    %117 = vector.load %arg6[%c0_34, %c0_35] : memref<1x32xf32, #tpu.memory_space<vmem>>, vector<1x32xf32>
    %118 = vector.broadcast %117 : vector<1x32xf32> to vector<8x32xf32>
    %119 = arith.mulf %116, %118 : vector<8x32xf32>
    %c0_36 = arith.constant 0 : index
    %c0_37 = arith.constant 0 : index
    %120 = vector.load %arg7[%c0_36, %c0_37] : memref<1x32xf32, #tpu.memory_space<vmem>>, vector<1x32xf32>
    %121 = vector.broadcast %120 : vector<1x32xf32> to vector<8x32xf32>
    %122 = arith.addf %119, %121 : vector<8x32xf32>
    %c0_38 = arith.constant 0 : index
    %c0_39 = arith.constant 0 : index
    %c0_40 = arith.constant 0 : index
    %123 = vector.load %arg8[%c0_38, %c0_39, %c0_40] : memref<1x8x32xf32, #tpu.memory_space<vmem>>, vector<1x8x32xf32>
    %124 = vector.shape_cast %123 : vector<1x8x32xf32> to vector<8x32xf32>
    %125 = vector.shape_cast %122 : vector<8x32xf32> to vector<1x8x32xf32>
    tpu.vector_store %arg8[%c0_38, %c0_39, %c0_40], %125 {strides = array<i32>} : memref<1x8x32xf32, #tpu.memory_space<vmem>>, vector<1x8x32xf32>,
    return
  }
  func.func @transform_0(%arg0: i32, %arg1: memref<2xi32, #tpu.memory_space<smem>>) -> (i32, i32, i32) {
    %c0_i32 = arith.constant 0 : i32
    %c0_i32_0 = arith.constant 0 : i32
    %c0_i32_1 = arith.constant 0 : i32
    return %arg0, %c0_i32, %c0_i32_0 : i32, i32, i32
  }
  func.func @transform_1(%arg0: i32, %arg1: memref<2xi32, #tpu.memory_space<smem>>) -> (i32, i32, i32) {
    %c0_i32 = arith.constant 0 : i32
    %c0_i32_0 = arith.constant 0 : i32
    %c0_i32_1 = arith.constant 0 : i32
    return %arg0, %c0_i32, %c0_i32_0 : i32, i32, i32
  }
  func.func @transform_2(%arg0: i32, %arg1: memref<2xi32, #tpu.memory_space<smem>>) -> (i32, i32) {
    %c0_i32 = arith.constant 0 : i32
    %c0_i32_0 = arith.constant 0 : i32
    %c0_i32_1 = arith.constant 0 : i32
    return %c0_i32, %c0_i32_0 : i32, i32
  }
  func.func @transform_3(%arg0: i32, %arg1: memref<2xi32, #tpu.memory_space<smem>>) -> (i32, i32) {
    %c0_i32 = arith.constant 0 : i32
    %c0_i32_0 = arith.constant 0 : i32
    %c0_i32_1 = arith.constant 0 : i32
    return %c0_i32, %c0_i32_0 : i32, i32
  }
  func.func @transform_4(%arg0: i32, %arg1: memref<2xi32, #tpu.memory_space<smem>>) -> (i32, i32) {
    %c0_i32 = arith.constant 0 : i32
    %c0_i32_0 = arith.constant 0 : i32
    %c0_i32_1 = arith.constant 0 : i32
    return %c0_i32, %c0_i32_0 : i32, i32
  }
  func.func @transform_5(%arg0: i32, %arg1: memref<2xi32, #tpu.memory_space<smem>>) -> (i32, i32) {
    %c0_i32 = arith.constant 0 : i32
    %c0_i32_0 = arith.constant 0 : i32
    %c0_i32_1 = arith.constant 0 : i32
    return %c0_i32, %c0_i32_0 : i32, i32
  }
  func.func @transform_6(%arg0: i32, %arg1: memref<2xi32, #tpu.memory_space<smem>>) -> (i32, i32, i32) {
    %c0_i32 = arith.constant 0 : i32
    %c0_i32_0 = arith.constant 0 : i32
    %c0_i32_1 = arith.constant 0 : i32
    return %arg0, %c0_i32, %c0_i32_0 : i32, i32, i32
  }
}

module attributes {stable_mosaic.version = 11 : i64} {
  func.func @_linear_addln_kernel(%arg0: i32, %arg1: i32, %arg2: memref<16x64xf32, #tpu.memory_space<vmem>>, %arg3: memref<64x32xbf16, #tpu.memory_space<vmem>>, %arg4: memref<1x32xf32, #tpu.memory_space<vmem>>, %arg5: memref<16x32xf32, #tpu.memory_space<vmem>>, %arg6: memref<1x32xf32, #tpu.memory_space<vmem>>, %arg7: memref<1x32xf32, #tpu.memory_space<vmem>>, %arg8: memref<16x32xf32, #tpu.memory_space<vmem>>, %arg9: memref<16x32xf32, #tpu.memory_space<vmem>>) attributes {dimension_semantics = [#tpu.dimension_semantics<parallel>, #tpu.dimension_semantics<arbitrary>], iteration_bounds = array<i64: 1, 1>, scalar_prefetch = 0 : i64, scratch_operands = 1 : i64, tpu.core_type = #tpu.core_type<tc>, window_params = [{transform_indices = @transform_0, window_bounds = array<i64: 16, 64>}, {transform_indices = @transform_1, window_bounds = array<i64: 64, 32>}, {pipeline_mode = #tpu.pipeline_mode<synchronous>, transform_indices = @transform_2, window_bounds = array<i64: 1, 32>}, {transform_indices = @transform_3, window_bounds = array<i64: 16, 32>}, {pipeline_mode = #tpu.pipeline_mode<synchronous>, transform_indices = @transform_4, window_bounds = array<i64: 1, 32>}, {pipeline_mode = #tpu.pipeline_mode<synchronous>, transform_indices = @transform_5, window_bounds = array<i64: 1, 32>}, {transform_indices = @transform_6, window_bounds = array<i64: 16, 32>}]} {
    %c0_i32 = arith.constant 0 : i32
    %0 = arith.cmpi eq, %arg1, %c0_i32 : i32
    %1 = arith.extui %0 : i1 to i32
    %c0_i32_0 = arith.constant 0 : i32
    %2 = arith.cmpi ne, %1, %c0_i32_0 : i32
    scf.if %2 {
      %cst_10 = arith.constant 0.000000e+00 : f32
      %13 = vector.broadcast %cst_10 : f32 to vector<16x32xf32>
      %c0_11 = arith.constant 0 : index
      %c0_12 = arith.constant 0 : index
      %14 = vector.load %arg9[%c0_11, %c0_12] : memref<16x32xf32, #tpu.memory_space<vmem>>, vector<16x32xf32>
      tpu.vector_store %arg9[%c0_11, %c0_12], %13 {strides = array<i32>} : memref<16x32xf32, #tpu.memory_space<vmem>>, vector<16x32xf32>,
    } else {
    }
    %c0 = arith.constant 0 : index
    %c0_1 = arith.constant 0 : index
    %3 = vector.load %arg9[%c0, %c0_1] : memref<16x32xf32, #tpu.memory_space<vmem>>, vector<16x32xf32>
    %c0_2 = arith.constant 0 : index
    %c0_3 = arith.constant 0 : index
    %4 = vector.load %arg2[%c0_2, %c0_3] : memref<16x64xf32, #tpu.memory_space<vmem>>, vector<16x64xf32>
    %5 = arith.truncf %4 : vector<16x64xf32> to vector<16x64xbf16>
    %c0_4 = arith.constant 0 : index
    %c0_5 = arith.constant 0 : index
    %6 = vector.load %arg3[%c0_4, %c0_5] : memref<64x32xbf16, #tpu.memory_space<vmem>>, vector<64x32xbf16>
    %cst = arith.constant dense<0.000000e+00> : vector<16x32xf32>
    %7 = tpu.matmul %5, %6, %cst {dimension_numbers = #tpu.dot_dimension_numbers<[1], [0], [0], [1], [0, 0, 1, 1], [], []>} : vector<16x64xbf16>, vector<64x32xbf16>, vector<16x32xf32> -> vector<16x32xf32>
    %8 = arith.addf %3, %7 : vector<16x32xf32>
    %c0_6 = arith.constant 0 : index
    %c0_7 = arith.constant 0 : index
    %9 = vector.load %arg9[%c0_6, %c0_7] : memref<16x32xf32, #tpu.memory_space<vmem>>, vector<16x32xf32>
    tpu.vector_store %arg9[%c0_6, %c0_7], %8 {strides = array<i32>} : memref<16x32xf32, #tpu.memory_space<vmem>>, vector<16x32xf32>,
    %c0_i32_8 = arith.constant 0 : i32
    %10 = arith.cmpi eq, %arg1, %c0_i32_8 : i32
    %11 = arith.extui %10 : i1 to i32
    %c0_i32_9 = arith.constant 0 : i32
    %12 = arith.cmpi ne, %11, %c0_i32_9 : i32
    scf.if %12 {
      %c0_10 = arith.constant 0 : index
      %c0_11 = arith.constant 0 : index
      %13 = vector.load %arg9[%c0_10, %c0_11] : memref<16x32xf32, #tpu.memory_space<vmem>>, vector<16x32xf32>
      %c0_12 = arith.constant 0 : index
      %c0_13 = arith.constant 0 : index
      %14 = vector.load %arg4[%c0_12, %c0_13] : memref<1x32xf32, #tpu.memory_space<vmem>>, vector<1x32xf32>
      %15 = vector.broadcast %14 : vector<1x32xf32> to vector<16x32xf32>
      %16 = arith.addf %13, %15 : vector<16x32xf32>
      %c0_14 = arith.constant 0 : index
      %c0_15 = arith.constant 0 : index
      %17 = vector.load %arg5[%c0_14, %c0_15] : memref<16x32xf32, #tpu.memory_space<vmem>>, vector<16x32xf32>
      %18 = arith.addf %16, %17 : vector<16x32xf32>
      %cst_16 = arith.constant dense<0.000000e+00> : vector<16xf32>
      %19 = vector.multi_reduction <add>, %18, %cst_16 [1] : vector<16x32xf32> to vector<16xf32>
      %20 = vector.shape_cast %19 : vector<16xf32> to vector<16x1xf32>
      %cst_17 = arith.constant 3.200000e+01 : f32
      %21 = vector.broadcast %cst_17 : f32 to vector<16x1xf32>
      %22 = arith.divf %20, %21 : vector<16x1xf32>
      %23 = vector.broadcast %22 : vector<16x1xf32> to vector<16x32xf32>
      %24 = arith.subf %18, %23 : vector<16x32xf32>
      %25 = arith.mulf %24, %24 : vector<16x32xf32>
      %cst_18 = arith.constant dense<0.000000e+00> : vector<16xf32>
      %26 = vector.multi_reduction <add>, %25, %cst_18 [1] : vector<16x32xf32> to vector<16xf32>
      %27 = vector.shape_cast %26 : vector<16xf32> to vector<16x1xf32>
      %cst_19 = arith.constant 3.200000e+01 : f32
      %28 = vector.broadcast %cst_19 : f32 to vector<16x1xf32>
      %29 = arith.divf %27, %28 : vector<16x1xf32>
      %cst_20 = arith.constant 9.99999974E-6 : f32
      %30 = vector.broadcast %cst_20 : f32 to vector<16x1xf32>
      %31 = arith.addf %29, %30 : vector<16x1xf32>
      %32 = math.rsqrt %31 : vector<16x1xf32>
      %33 = vector.broadcast %32 : vector<16x1xf32> to vector<16x32xf32>
      %34 = arith.mulf %24, %33 : vector<16x32xf32>
      %c0_21 = arith.constant 0 : index
      %c0_22 = arith.constant 0 : index
      %35 = vector.load %arg6[%c0_21, %c0_22] : memref<1x32xf32, #tpu.memory_space<vmem>>, vector<1x32xf32>
      %36 = vector.broadcast %35 : vector<1x32xf32> to vector<16x32xf32>
      %37 = arith.mulf %34, %36 : vector<16x32xf32>
      %c0_23 = arith.constant 0 : index
      %c0_24 = arith.constant 0 : index
      %38 = vector.load %arg7[%c0_23, %c0_24] : memref<1x32xf32, #tpu.memory_space<vmem>>, vector<1x32xf32>
      %39 = vector.broadcast %38 : vector<1x32xf32> to vector<16x32xf32>
      %40 = arith.addf %37, %39 : vector<16x32xf32>
      %c0_25 = arith.constant 0 : index
      %c0_26 = arith.constant 0 : index
      %41 = vector.load %arg8[%c0_25, %c0_26] : memref<16x32xf32, #tpu.memory_space<vmem>>, vector<16x32xf32>
      tpu.vector_store %arg8[%c0_25, %c0_26], %40 {strides = array<i32>} : memref<16x32xf32, #tpu.memory_space<vmem>>, vector<16x32xf32>,
    } else {
    }
    return
  }
  func.func @transform_0(%arg0: i32, %arg1: i32) -> (i32, i32) {
    %c0_i32 = arith.constant 0 : i32
    return %arg0, %arg1 : i32, i32
  }
  func.func @transform_1(%arg0: i32, %arg1: i32) -> (i32, i32) {
    %c0_i32 = arith.constant 0 : i32
    %c0_i32_0 = arith.constant 0 : i32
    return %arg1, %c0_i32 : i32, i32
  }
  func.func @transform_2(%arg0: i32, %arg1: i32) -> (i32, i32) {
    %c0_i32 = arith.constant 0 : i32
    %c0_i32_0 = arith.constant 0 : i32
    %c0_i32_1 = arith.constant 0 : i32
    return %c0_i32, %c0_i32_0 : i32, i32
  }
  func.func @transform_3(%arg0: i32, %arg1: i32) -> (i32, i32) {
    %c0_i32 = arith.constant 0 : i32
    %c0_i32_0 = arith.constant 0 : i32
    return %arg0, %c0_i32 : i32, i32
  }
  func.func @transform_4(%arg0: i32, %arg1: i32) -> (i32, i32) {
    %c0_i32 = arith.constant 0 : i32
    %c0_i32_0 = arith.constant 0 : i32
    %c0_i32_1 = arith.constant 0 : i32
    return %c0_i32, %c0_i32_0 : i32, i32
  }
  func.func @transform_5(%arg0: i32, %arg1: i32) -> (i32, i32) {
    %c0_i32 = arith.constant 0 : i32
    %c0_i32_0 = arith.constant 0 : i32
    %c0_i32_1 = arith.constant 0 : i32
    return %c0_i32, %c0_i32_0 : i32, i32
  }
  func.func @transform_6(%arg0: i32, %arg1: i32) -> (i32, i32) {
    %c0_i32 = arith.constant 0 : i32
    %c0_i32_0 = arith.constant 0 : i32
    return %arg0, %c0_i32 : i32, i32
  }
}

module attributes {stable_mosaic.version = 11 : i64} {
  func.func @_linear_addln_kernel(%arg0: i32, %arg1: i32, %arg2: memref<16x64xf32, #tpu.memory_space<vmem>>, %arg3: memref<64x32xbf16, #tpu.memory_space<vmem>>, %arg4: memref<1x32xf32, #tpu.memory_space<vmem>>, %arg5: memref<16x32xf32, #tpu.memory_space<vmem>>, %arg6: memref<1x32xf32, #tpu.memory_space<vmem>>, %arg7: memref<1x32xf32, #tpu.memory_space<vmem>>, %arg8: memref<16x32xf32, #tpu.memory_space<vmem>>, %arg9: memref<16x32xf32, #tpu.memory_space<vmem>>) attributes {dimension_semantics = [#tpu.dimension_semantics<parallel>, #tpu.dimension_semantics<arbitrary>], iteration_bounds = array<i64: 1, 1>, scalar_prefetch = 0 : i64, scratch_operands = 1 : i64, tpu.core_type = #tpu.core_type<tc>, window_params = [{transform_indices = @transform_0, window_bounds = array<i64: 16, 64>}, {transform_indices = @transform_1, window_bounds = array<i64: 64, 32>}, {pipeline_mode = #tpu.pipeline_mode<synchronous>, transform_indices = @transform_2, window_bounds = array<i64: 1, 32>}, {transform_indices = @transform_3, window_bounds = array<i64: 16, 32>}, {pipeline_mode = #tpu.pipeline_mode<synchronous>, transform_indices = @transform_4, window_bounds = array<i64: 1, 32>}, {pipeline_mode = #tpu.pipeline_mode<synchronous>, transform_indices = @transform_5, window_bounds = array<i64: 1, 32>}, {transform_indices = @transform_6, window_bounds = array<i64: 16, 32>}]} {
    %c0_i32 = arith.constant 0 : i32
    %0 = arith.cmpi eq, %arg1, %c0_i32 : i32
    %1 = arith.extui %0 : i1 to i32
    %c0_i32_0 = arith.constant 0 : i32
    %2 = arith.cmpi ne, %1, %c0_i32_0 : i32
    scf.if %2 {
      %cst_10 = arith.constant 0.000000e+00 : f32
      %13 = vector.broadcast %cst_10 : f32 to vector<16x32xf32>
      %c0_11 = arith.constant 0 : index
      %c0_12 = arith.constant 0 : index
      %14 = vector.load %arg9[%c0_11, %c0_12] : memref<16x32xf32, #tpu.memory_space<vmem>>, vector<16x32xf32>
      tpu.vector_store %arg9[%c0_11, %c0_12], %13 {strides = array<i32>} : memref<16x32xf32, #tpu.memory_space<vmem>>, vector<16x32xf32>,
    } else {
    }
    %c0 = arith.constant 0 : index
    %c0_1 = arith.constant 0 : index
    %3 = vector.load %arg9[%c0, %c0_1] : memref<16x32xf32, #tpu.memory_space<vmem>>, vector<16x32xf32>
    %c0_2 = arith.constant 0 : index
    %c0_3 = arith.constant 0 : index
    %4 = vector.load %arg2[%c0_2, %c0_3] : memref<16x64xf32, #tpu.memory_space<vmem>>, vector<16x64xf32>
    %5 = arith.truncf %4 : vector<16x64xf32> to vector<16x64xbf16>
    %c0_4 = arith.constant 0 : index
    %c0_5 = arith.constant 0 : index
    %6 = vector.load %arg3[%c0_4, %c0_5] : memref<64x32xbf16, #tpu.memory_space<vmem>>, vector<64x32xbf16>
    %cst = arith.constant dense<0.000000e+00> : vector<16x32xf32>
    %7 = tpu.matmul %5, %6, %cst {dimension_numbers = #tpu.dot_dimension_numbers<[1], [0], [0], [1], [0, 0, 1, 1], [], []>} : vector<16x64xbf16>, vector<64x32xbf16>, vector<16x32xf32> -> vector<16x32xf32>
    %8 = arith.addf %3, %7 : vector<16x32xf32>
    %c0_6 = arith.constant 0 : index
    %c0_7 = arith.constant 0 : index
    %9 = vector.load %arg9[%c0_6, %c0_7] : memref<16x32xf32, #tpu.memory_space<vmem>>, vector<16x32xf32>
    tpu.vector_store %arg9[%c0_6, %c0_7], %8 {strides = array<i32>} : memref<16x32xf32, #tpu.memory_space<vmem>>, vector<16x32xf32>,
    %c0_i32_8 = arith.constant 0 : i32
    %10 = arith.cmpi eq, %arg1, %c0_i32_8 : i32
    %11 = arith.extui %10 : i1 to i32
    %c0_i32_9 = arith.constant 0 : i32
    %12 = arith.cmpi ne, %11, %c0_i32_9 : i32
    scf.if %12 {
      %c0_10 = arith.constant 0 : index
      %c0_11 = arith.constant 0 : index
      %13 = vector.load %arg9[%c0_10, %c0_11] : memref<16x32xf32, #tpu.memory_space<vmem>>, vector<16x32xf32>
      %c0_12 = arith.constant 0 : index
      %c0_13 = arith.constant 0 : index
      %14 = vector.load %arg4[%c0_12, %c0_13] : memref<1x32xf32, #tpu.memory_space<vmem>>, vector<1x32xf32>
      %15 = vector.broadcast %14 : vector<1x32xf32> to vector<16x32xf32>
      %16 = arith.addf %13, %15 : vector<16x32xf32>
      %c0_14 = arith.constant 0 : index
      %c0_15 = arith.constant 0 : index
      %17 = vector.load %arg5[%c0_14, %c0_15] : memref<16x32xf32, #tpu.memory_space<vmem>>, vector<16x32xf32>
      %18 = arith.addf %16, %17 : vector<16x32xf32>
      %cst_16 = arith.constant dense<0.000000e+00> : vector<16xf32>
      %19 = vector.multi_reduction <add>, %18, %cst_16 [1] : vector<16x32xf32> to vector<16xf32>
      %20 = vector.shape_cast %19 : vector<16xf32> to vector<16x1xf32>
      %cst_17 = arith.constant 3.200000e+01 : f32
      %21 = vector.broadcast %cst_17 : f32 to vector<16x1xf32>
      %22 = arith.divf %20, %21 : vector<16x1xf32>
      %23 = vector.broadcast %22 : vector<16x1xf32> to vector<16x32xf32>
      %24 = arith.subf %18, %23 : vector<16x32xf32>
      %25 = arith.mulf %24, %24 : vector<16x32xf32>
      %cst_18 = arith.constant dense<0.000000e+00> : vector<16xf32>
      %26 = vector.multi_reduction <add>, %25, %cst_18 [1] : vector<16x32xf32> to vector<16xf32>
      %27 = vector.shape_cast %26 : vector<16xf32> to vector<16x1xf32>
      %cst_19 = arith.constant 3.200000e+01 : f32
      %28 = vector.broadcast %cst_19 : f32 to vector<16x1xf32>
      %29 = arith.divf %27, %28 : vector<16x1xf32>
      %cst_20 = arith.constant 9.99999974E-6 : f32
      %30 = vector.broadcast %cst_20 : f32 to vector<16x1xf32>
      %31 = arith.addf %29, %30 : vector<16x1xf32>
      %32 = math.rsqrt %31 : vector<16x1xf32>
      %33 = vector.broadcast %32 : vector<16x1xf32> to vector<16x32xf32>
      %34 = arith.mulf %24, %33 : vector<16x32xf32>
      %c0_21 = arith.constant 0 : index
      %c0_22 = arith.constant 0 : index
      %35 = vector.load %arg6[%c0_21, %c0_22] : memref<1x32xf32, #tpu.memory_space<vmem>>, vector<1x32xf32>
      %36 = vector.broadcast %35 : vector<1x32xf32> to vector<16x32xf32>
      %37 = arith.mulf %34, %36 : vector<16x32xf32>
      %c0_23 = arith.constant 0 : index
      %c0_24 = arith.constant 0 : index
      %38 = vector.load %arg7[%c0_23, %c0_24] : memref<1x32xf32, #tpu.memory_space<vmem>>, vector<1x32xf32>
      %39 = vector.broadcast %38 : vector<1x32xf32> to vector<16x32xf32>
      %40 = arith.addf %37, %39 : vector<16x32xf32>
      %c0_25 = arith.constant 0 : index
      %c0_26 = arith.constant 0 : index
      %41 = vector.load %arg8[%c0_25, %c0_26] : memref<16x32xf32, #tpu.memory_space<vmem>>, vector<16x32xf32>
      tpu.vector_store %arg8[%c0_25, %c0_26], %40 {strides = array<i32>} : memref<16x32xf32, #tpu.memory_space<vmem>>, vector<16x32xf32>,
    } else {
    }
    return
  }
  func.func @transform_0(%arg0: i32, %arg1: i32) -> (i32, i32) {
    %c0_i32 = arith.constant 0 : i32
    return %arg0, %arg1 : i32, i32
  }
  func.func @transform_1(%arg0: i32, %arg1: i32) -> (i32, i32) {
    %c0_i32 = arith.constant 0 : i32
    %c0_i32_0 = arith.constant 0 : i32
    return %arg1, %c0_i32 : i32, i32
  }
  func.func @transform_2(%arg0: i32, %arg1: i32) -> (i32, i32) {
    %c0_i32 = arith.constant 0 : i32
    %c0_i32_0 = arith.constant 0 : i32
    %c0_i32_1 = arith.constant 0 : i32
    return %c0_i32, %c0_i32_0 : i32, i32
  }
  func.func @transform_3(%arg0: i32, %arg1: i32) -> (i32, i32) {
    %c0_i32 = arith.constant 0 : i32
    %c0_i32_0 = arith.constant 0 : i32
    return %arg0, %c0_i32 : i32, i32
  }
  func.func @transform_4(%arg0: i32, %arg1: i32) -> (i32, i32) {
    %c0_i32 = arith.constant 0 : i32
    %c0_i32_0 = arith.constant 0 : i32
    %c0_i32_1 = arith.constant 0 : i32
    return %c0_i32, %c0_i32_0 : i32, i32
  }
  func.func @transform_5(%arg0: i32, %arg1: i32) -> (i32, i32) {
    %c0_i32 = arith.constant 0 : i32
    %c0_i32_0 = arith.constant 0 : i32
    %c0_i32_1 = arith.constant 0 : i32
    return %c0_i32, %c0_i32_0 : i32, i32
  }
  func.func @transform_6(%arg0: i32, %arg1: i32) -> (i32, i32) {
    %c0_i32 = arith.constant 0 : i32
    %c0_i32_0 = arith.constant 0 : i32
    return %arg0, %c0_i32 : i32, i32
  }
}

</mosaic_0001>

<bundles_post_ra>
// kernel: bert_encoder_forward.8
= control target key start
LH: loop header
LB: loop body
LE: loop exit
PB: predicated region body
PF: predicated region fallthrough
CT: control target
= control target key end

     0   :  { %vm19_vm0 = vcmask 785408   ;;  %v132_v0 = vmov 0.0   ;;  %vm133_vm1 = vmmov 0   ;;  %vm43_vm2 = vcmask 261120   ;;  %s181_s1 = inlined_call_operand.vmem [shape: bf16[32,96], index: 1, kind: input, shape index: {}]   ;;  %s182_s0 = inlined_call_operand.vmem [shape: f32[16,32], index: 0, kind: input, shape index: {}]   ;;  %s183_s2 = inlined_call_operand.vmem [shape: f32[1,96], index: 2, kind: input, shape index: {}]   ;;  %s184_s3 = inlined_call_operand.vmem [shape: f32[16,96], index: 3, kind: output, shape index: {}]  }
   0x1   :  { %120 = vmatprep.subr.bf16.mxu0 %v132_v0  ;;  %v130_v1 = vld [vmem:[%s181_s1 + $0x8] sm:$0xff]   ;;  %124 = vmatprep.mubr.msk.bf16.mxu0 %vm133_vm1, %v132_v0  ;;  %20 = vst.msk [vmem:[#allocation2] sm:$0xff] %vm19_vm0, %v132_v0  ;;  %21 = vst.msk [vmem:[#allocation2 + $0x8] sm:$0xff] %vm19_vm0, %v132_v0  ;;  %v131_v2 = vld [vmem:[%s181_s1] sm:$0xff]  }
   0x2   :  { %121 = vmatpush3.bf16.msra.mxu0 %v130_v1  ;;  %v24_v3 = vld [vmem:[%s182_s0] sm:$0xff]  ;;  %v25_v4 = vld [vmem:[%s182_s0 + $0x8] sm:$0xff] }
   0x3   :  { %122 = vmatprep.subr.bf16.mxu0 %v132_v0  ;;  %v26_v5 = vpack.c.bf16 %v25_v4, %v24_v3  ;;  %v116_v14 = vld [vmem:[%s183_s2] ss:$0 sm:$0xff] }
   0x6   :  { %123 = vmatpush3.bf16.msra.mxu0 %v131_v2 }
   0x8   :  { %v22_v6 = vld [vmem:[#allocation2] sm:$0xff]  ;;  %v23_v10 = vld [vmem:[#allocation2 + $0x8] sm:$0xff] }
   0x9   :  { %125 = vmatmul.mubr.msk.bf16.vlgmr.msra.gmra.mxu0 %vm43_vm2, %v26_v5 }
  0xc9   :  { %v81_v7 = vpop.f32.mrf.mxu0 }
  0xca   :  { %v88_v8 = vadd.f32 %v81_v7, %v22_v6 }
  0xcb   :  { %v126_v9 = vpop.f32.mrf.mxu0 }
  0xcc   :  { %91 = vst.msk [vmem:[#allocation2] sm:$0xff] %vm19_vm0, %v88_v8 }
  0xcd   :  { %v84_v11 = vpop.f32.mrf.mxu0 }
  0xce   :  { %v89_v12 = vadd.f32 %v84_v11, %v23_v10 }
  0xcf   :  { %v127_v13 = vpop.f32.mrf.mxu0 }
  0xd0   :  { %92 = vst.msk [vmem:[#allocation2 + $0x8] sm:$0xff] %vm19_vm0, %v89_v12 }
  0xd3   :  { %v96_v15 = vld [vmem:[#allocation2] sm:$0xff] }
  0xd4   :  { %v105_v16 = vadd.f32 %v116_v14, %v96_v15 }
  0xd6   :  { %107 = vst.msk [vmem:[%s184_s3] sm:$0xff] %vm19_vm0, %v105_v16 }
  0xd7   :  { %v97_v17 = vld [vmem:[#allocation2 + $0x8] sm:$0xff] }
  0xd8   :  { %v106_v18 = vadd.f32 %v116_v14, %v97_v17 }
  0xda   :  { %108 = vst.msk [vmem:[%s184_s3 + $0x8] sm:$0xff] %vm19_vm0, %v106_v18 }

// kernel: bert_encoder_forward.10
= control target key start
LH: loop header
LB: loop body
LE: loop exit
PB: predicated region body
PF: predicated region fallthrough
CT: control target
= control target key end

     0   :  { %vm19_vm0 = vcmask 523264   ;;  %v134_v0 = vmov 0.0   ;;  %vm135_vm1 = vmmov 0   ;;  %vm43_vm2 = vcmask 261120   ;;  %s183_s1 = inlined_call_operand.vmem [shape: bf16[32,64], index: 1, kind: input, shape index: {}]   ;;  %s184_s0 = inlined_call_operand.vmem [shape: f32[16,32], index: 0, kind: input, shape index: {}]   ;;  %s185_s2 = inlined_call_operand.vmem [shape: f32[1,64], index: 2, kind: input, shape index: {}]   ;;  %s186_s3 = inlined_call_operand.vmem [shape: f32[16,64], index: 3, kind: output, shape index: {}]  }
   0x1   :  { %122 = vmatprep.subr.bf16.mxu0 %v134_v0  ;;  %v132_v1 = vld [vmem:[%s183_s1 + $0x8] sm:$0xff]   ;;  %126 = vmatprep.mubr.msk.bf16.mxu0 %vm135_vm1, %v134_v0  ;;  %20 = vst.msk [vmem:[#allocation2] sm:$0xff] %vm19_vm0, %v134_v0  ;;  %21 = vst.msk [vmem:[#allocation2 + $0x8] sm:$0xff] %vm19_vm0, %v134_v0  ;;  %v133_v2 = vld [vmem:[%s183_s1] sm:$0xff]  }
   0x2   :  { %123 = vmatpush3.bf16.msra.mxu0 %v132_v1  ;;  %v24_v3 = vld [vmem:[%s184_s0] sm:$0xff]  ;;  %v25_v4 = vld [vmem:[%s184_s0 + $0x8] sm:$0xff] }
   0x3   :  { %124 = vmatprep.subr.bf16.mxu0 %v134_v0  ;;  %v26_v5 = vpack.c.bf16 %v25_v4, %v24_v3  ;;  %v118_v14 = vld [vmem:[%s185_s2] ss:$0 sm:$0xff] }
   0x6   :  { %125 = vmatpush3.bf16.msra.mxu0 %v133_v2 }
   0x8   :  { %v22_v6 = vld [vmem:[#allocation2] sm:$0xff]  ;;  %v23_v10 = vld [vmem:[#allocation2 + $0x8] sm:$0xff] }
   0x9   :  { %127 = vmatmul.mubr.msk.bf16.vlgmr.msra.gmra.mxu0 %vm43_vm2, %v26_v5 }
  0xc9   :  { %v81_v7 = vpop.f32.mrf.mxu0 }
  0xca   :  { %v88_v8 = vadd.f32 %v81_v7, %v22_v6 }
  0xcb   :  { %v128_v9 = vpop.f32.mrf.mxu0 }
  0xcc   :  { %91 = vst.msk [vmem:[#allocation2] sm:$0xff] %vm19_vm0, %v88_v8 }
  0xcd   :  { %v84_v11 = vpop.f32.mrf.mxu0 }
  0xce   :  { %v89_v12 = vadd.f32 %v84_v11, %v23_v10 }
  0xcf   :  { %v129_v13 = vpop.f32.mrf.mxu0 }
  0xd0   :  { %92 = vst.msk [vmem:[#allocation2 + $0x8] sm:$0xff] %vm19_vm0, %v89_v12 }
  0xd3   :  { %v96_v15 = vld [vmem:[#allocation2] sm:$0xff] }
  0xd4   :  { %v105_v16 = vadd.f32 %v118_v14, %v96_v15 }
  0xd6   :  { %v107_v17 = vmax.f32 %v105_v16, 0.0 }
  0xd7   :  { %v97_v18 = vld [vmem:[#allocation2 + $0x8] sm:$0xff] }
  0xd8   :  { %109 = vst.msk [vmem:[%s186_s3] sm:$0xff] %vm19_vm0, %v107_v17  ;;  %v106_v19 = vadd.f32 %v118_v14, %v97_v18 }
  0xda   :  { %v108_v20 = vmax.f32 %v106_v19, 0.0 }
  0xdc   :  { %110 = vst.msk [vmem:[%s186_s3 + $0x8] sm:$0xff] %vm19_vm0, %v108_v20 }

// kernel: bert_encoder_forward.11
= control target key start
LH: loop header
LB: loop body
LE: loop exit
PB: predicated region body
PF: predicated region fallthrough
CT: control target
= control target key end

     0   :  { %vm28_vm0 = vcmask 261120   ;;  %v222_v0 = vmov 0.0   ;;  %vm223_vm1 = vmmov 0   ;;  %vm68_vm2 = vcmask 523264   ;;  %s308_s1 = inlined_call_operand.vmem [shape: bf16[64,32], index: 1, kind: input, shape index: {}]   ;;  %s309_s0 = inlined_call_operand.vmem [shape: f32[16,64], index: 0, kind: input, shape index: {}]   ;;  %s310_s2 = inlined_call_operand.vmem [shape: f32[1,32], index: 2, kind: input, shape index: {}]   ;;  %s311_s3 = inlined_call_operand.vmem [shape: f32[16,32], index: 3, kind: input, shape index: {}]   ;;  %s312_s4 = inlined_call_operand.vmem [shape: f32[1,32], index: 4, kind: input, shape index: {}]   ;;  %s313_s5 = inlined_call_operand.vmem [shape: f32[1,32], index: 5, kind: input, shape index: {}]   ;;  %s314_s6 = inlined_call_operand.vmem [shape: f32[16,32], index: 6, kind: output, shape index: {}]  }
   0x1   :  { %200 = vmatprep.subr.bf16.mxu0 %v222_v0  ;;  %v214_v1 = vld [vmem:[%s308_s1 + $0x18] sm:$0xff]   ;;  %208 = vmatprep.mubr.msk.bf16.mxu0 %vm223_vm1, %v222_v0  ;;  %29 = vst.msk [vmem:[#allocation2] sm:$0xff] %vm28_vm0, %v222_v0  ;;  %30 = vst.msk [vmem:[#allocation2 + $0x8] sm:$0xff] %vm28_vm0, %v222_v0  ;;  %v215_v2 = vld [vmem:[%s308_s1 + $0x10] sm:$0xff]  }
   0x2   :  { %201 = vmatpush3.bf16.msra.mxu0 %v214_v1  ;;  %v216_v3 = vld [vmem:[%s308_s1 + $0x8] sm:$0xff]   ;;  %v217_v4 = vld [vmem:[%s308_s1] sm:$0xff]  }
   0x3   :  { %202 = vmatprep.subr.bf16.mxu0 %v222_v0  ;;  %v33_v5 = vld [vmem:[%s309_s0] sm:$0xff]  ;;  %v34_v6 = vld [vmem:[%s309_s0 + $0x8] sm:$0xff] }
   0x4   :  { %v35_v7 = vpack.c.bf16 %v34_v6, %v33_v5  ;;  %v192_v16 = vld [vmem:[%s310_s2] ss:$0 sm:$0xff]  ;;  %v133_v22 = vld [vmem:[%s311_s3 + $0x8] sm:$0xff] }
   0x5   :  { %v132_v18 = vld [vmem:[%s311_s3] sm:$0xff] }
   0x6   :  { %203 = vmatpush3.bf16.msra.mxu0 %v215_v2  ;;  %v193_v44 = vld [vmem:[%s312_s4] ss:$0 sm:$0xff] }
   0x7   :  { %204 = vmatprep.subr.bf16.mxu0 %v222_v0  ;;  %v194_v46 = vld [vmem:[%s313_s5] ss:$0 sm:$0xff] }
   0x8   :  { %v31_v8 = vld [vmem:[#allocation2] sm:$0xff]  ;;  %v32_v12 = vld [vmem:[#allocation2 + $0x8] sm:$0xff] }
   0xa   :  { %205 = vmatpush3.bf16.msra.mxu0 %v216_v3 }
   0xb   :  { %206 = vmatprep.subr.bf16.mxu0 %v222_v0 }
   0xe   :  { %207 = vmatpush3.bf16.msra.mxu0 %v217_v4 }
  0x11   :  { %209 = vmatmul.mubr.msk.bf16.vlgmr.msra.gmra.mxu0 %vm68_vm2, %v35_v7 }
  0xd1   :  { %v106_v9 = vpop.f32.mrf.mxu0 }
  0xd2   :  { %v113_v10 = vadd.f32 %v106_v9, %v31_v8 }
  0xd3   :  { %v210_v11 = vpop.f32.mrf.mxu0 }
  0xd4   :  { %116 = vst.msk [vmem:[#allocation2] sm:$0xff] %vm28_vm0, %v113_v10 }
  0xd5   :  { %v109_v13 = vpop.f32.mrf.mxu0 }
  0xd6   :  { %v114_v14 = vadd.f32 %v109_v13, %v32_v12 }
  0xd7   :  { %v211_v15 = vpop.f32.mrf.mxu0 }
  0xd8   :  { %117 = vst.msk [vmem:[#allocation2 + $0x8] sm:$0xff] %vm28_vm0, %v114_v14 }
  0xdb   :  { %v121_v17 = vld [vmem:[#allocation2] sm:$0xff] }
  0xdc   :  { %v130_v19 = vadd.f32 %v192_v16, %v121_v17 }
  0xde   :  { %v134_v20 = vadd.f32 %v132_v18, %v130_v19 }
  0xdf   :  { %v122_v21 = vld [vmem:[#allocation2 + $0x8] sm:$0xff] }
  0xe0   :  { %v136_v23 = vsel %vm28_vm0, %v134_v20, 0.0  ;;  %v131_v24 = vadd.f32 %v192_v16, %v122_v21 }
  0xe1   :  { %137 = vadd.xlane.f32.xlu0 %v136_v23 }
  0xe2   :  { %v135_v25 = vadd.f32 %v133_v22, %v131_v24 }
  0xe4   :  { %v139_v26 = vsel %vm28_vm0, %v135_v25, 0.0 }
  0xe5   :  { %140 = vadd.xlane.f32.xlu0 %v139_v26 }
 0x16a   :  { %v138_v27 = vpop.xlane.xlu0 %137 }
 0x16b   :  { %v143_v28 = vmul.f32 0.03125, %v138_v27 }
 0x16d   :  { %v145_v29 = vsub.f32 %v134_v20, %v143_v28 }
 0x16e   :  { %v141_v30 = vpop.xlane.xlu0 %140 }
 0x16f   :  { %v144_v31 = vmul.f32 0.03125, %v141_v30  ;;  %v147_v32 = vmul.f32 %v145_v29, %v145_v29 }
 0x171   :  { %v146_v33 = vsub.f32 %v135_v25, %v144_v31  ;;  %v149_v34 = vsel %vm28_vm0, %v147_v32, 0.0 }
 0x172   :  { %150 = vadd.xlane.f32.xlu1 %v149_v34 }
 0x173   :  { %v148_v35 = vmul.f32 %v146_v33, %v146_v33 }
 0x175   :  { %v152_v36 = vsel %vm28_vm0, %v148_v35, 0.0 }
 0x176   :  { %153 = vadd.xlane.f32.xlu1 %v152_v36 }
 0x1fb   :  { %v151_v37 = vpop.xlane.xlu1 %150 }
 0x1fc   :  { %v155_v38 = vmul.f32 0.03125, %v151_v37 }
 0x1fe   :  { %v157_v39 = vadd.f32 1e-05, %v155_v38 }
 0x1ff   :  { %v154_v40 = vpop.xlane.xlu1 %153 }
 0x200   :  { %218 = vrsqrt.f32 %v157_v39  ;;  %v156_v41 = vmul.f32 0.03125, %v154_v40 }
 0x202   :  { %v158_v42 = vadd.f32 1e-05, %v156_v41 }
 0x204   :  { %220 = vrsqrt.f32 %v158_v42 }
 0x20d   :  { %v219_v43 = vpop.eup %218 }
 0x20e   :  { %v161_v45 = vmul.f32 %v219_v43, %v145_v29 }
 0x210   :  { %v170_v47 = vmul.f32 %v193_v44, %v161_v45 }
 0x211   :  { %v221_v48 = vpop.eup %220 }
 0x212   :  { %v179_v49 = vadd.f32 %v194_v46, %v170_v47  ;;  %v162_v50 = vmul.f32 %v221_v48, %v146_v33 }
 0x214   :  { %181 = vst.msk [vmem:[%s314_s6] sm:$0xff] %vm28_vm0, %v179_v49  ;;  %v171_v51 = vmul.f32 %v193_v44, %v162_v50 }
 0x216   :  { %v180_v52 = vadd.f32 %v194_v46, %v171_v51 }
 0x218   :  { %182 = vst.msk [vmem:[%s314_s6 + $0x8] sm:$0xff] %vm28_vm0, %v180_v52 }

// kernel: bert_encoder_forward.9
= control target key start
LH: loop header
LB: loop body
LE: loop exit
PB: predicated region body
PF: predicated region fallthrough
CT: control target
= control target key end

     0   :  { %s1264_s0 = inlined_call_operand.vmem [shape: s32[2], index: 0, kind: input, shape index: {}]   ;;  %s1265_s1 = inlined_call_operand.vmem [shape: f32[2,8,96], index: 1, kind: input, shape index: {}]   ;;  %s1266_s2 = inlined_call_operand.vmem [shape: f32[2,8,32], index: 2, kind: input, shape index: {}]   ;;  %s1267_s3 = inlined_call_operand.vmem [shape: bf16[32,32], index: 3, kind: input, shape index: {}]   ;;  %s1268_s4 = inlined_call_operand.vmem [shape: f32[1,32], index: 4, kind: input, shape index: {}]   ;;  %s1269_s5 = inlined_call_operand.vmem [shape: f32[1,32], index: 5, kind: input, shape index: {}]   ;;  %s1270_s6 = inlined_call_operand.vmem [shape: f32[1,32], index: 6, kind: input, shape index: {}]   ;;  %s1271_s7 = inlined_call_operand.vmem [shape: f32[2,8,32], index: 7, kind: output, shape index: {}]  }
   0x1   :  { %s12_s26 = sshll.u32 %s1264_s0, 4  ;;  %s13_s26 = int_to_ptr.vmem [resolvable:$true] %s12_s26 }
   0x2   :  { %s1051_s27 = scalar_lea.vmem %s13_s26, 16  ;;  %p1056_p1 = scmp.lt.s32.totalorder %s13_s26, %s13_s26 }
   0x3   :  { %p1052_p0 = scmp.ne.s32.totalorder %s13_s26, %s1051_s27  ;;  %p1057_p2 = scmp.lt.s32.totalorder %s1051_s27, %s1051_s27 }
   0x5   :  { %p1058_p3 = por %p1057_p2, %p1056_p1 }
   0x7   :  { %p1059_p4 = pnand %p1058_p3, %p1052_p0 }
   0x9   :  { %1062 = shalt.err (!%p1059_p4)  }
   0xa   :  { %s1073_s28 = smov [#allocation3]  }
   0xb   :  { %15 = dma.vmem_to_smem %s13_s26, 16, %s1073_s28, [#allocation2] }
   0xc   :  { %1067 = dma.done.wait [#allocation2], 16 }
   0xd   :  { %1068 = vsyncadd [#allocation2], 4294967280 }
   0xe   :  { %17 = sfence }
   0xf   :  { %s1133_s29 = smov 0  }
  0x10 LB: > { %s1139_s0 = sadd.s32 4294967295, %s1071_s29   ;;  %p911_p5 = scmp.ge.s32.totalorder %s1071_s29, 1  ;;  %s1071_s29 = sphi %s1133_s29, %s23_s29  }
  0x11   : > { %p227_p6 = scmp.lt.s32.totalorder %s1071_s29, 3 }
  0x13   : > { %p228_p7 = pnand %p911_p5, %p227_p6 }
  0x14   : > { %p259_p8 = scmp.lt.s32.totalorder (!%p228_p7), %s1139_s0, 1  ;;  %s1076_s12 = smov (!%p228_p7), 96  }
  0x15   : > { %231 = sbr.rel (%p228_p7) target bundleno = 2058 (0x80a), region = 44  ;;  %s1077_s13 = smov (!%p228_p7), 64  }
  0x16   : > { %s1078_s14 = smov (!%p228_p7), 88   ;;  %s272_s15 = sld [smem:[#allocation3 + %s1139_s0]] (!%p228_p7) }
  0x17   : > { %s1079_s16 = smov (!%p228_p7), 72   ;;  %s1080_s17 = smov (!%p228_p7), 120  }
  0x18   : > { %s1081_s18 = smov (!%p228_p7), 80   ;;  %s1082_s19 = smov (!%p228_p7), 112  }
  0x19   : > { %s1083_s20 = smov (!%p228_p7), 104   ;;  %s1084_s21 = smov (!%p228_p7), 56  }
  0x1a   : > { %v1074_v0 = vmov 0.0   ;;  %vm1075_vm0 = vmmov 0   ;;  %s260_s30 = scalar_select %p259_p8, %s1139_s0, 1  ;;  %vm282_vm1 = vcmask 64512   ;;  %v274_v5 = vlaneseq }
  0x1b   : > { %950 = vmatprep.subr.bf16.mxu0 %v1074_v0  ;;  %952 = vmatprep.mubr.msk.bf16.mxu0 %vm1075_vm0, %v1074_v0  ;;  %vm347_vm3 = vcmask 1043456   ;;  %s1085_s22 = smov 48   ;;  %s1086_s23 = smov 40   ;;  %vm737_vm4 = vcmask 130048   ;;  %vm739_vm5 = vcmask 195584   ;;  %vm765_vm6 = vcmask 261120  }
  0x1c   : > { %956 = vmatprep.subr.bf16.mxu1 %v1074_v0  ;;  %958 = vmatprep.mubr.msk.bf16.mxu1 %vm1075_vm0, %v1074_v0  ;;  %s1151_s8 = sshll.u32 %s260_s30, 3  ;;  %v275_v6 = vand.u32 127, %v274_v5  ;;  %v276_v7 = vstv %s272_s15  ;;  %s1087_s24 = smov 8  }
  0x1d   : > { %s262_s11 = scalar_lea.vmem %s1265_s1, %s1151_s8  ;;  %s1088_s0 = smov 16  }
  0x1e   : > { %v273_v1 = vld [vmem:[%s262_s11] sm:$0xff]  ;;  %vm1169_vm2 = vcmp.lt.s32.totalorder %v275_v6, %v276_v7  ;;  %s1089_s30 = smov 24   ;;  %s266_s11 = scalar_lea.vmem %s1266_s2, %s1151_s8 }
  0x1f   : > { %v1157_v2 = vpack.c.bf16 %v273_v1, %v273_v1 }
  0x21   : > { %280 = vrot.lane.b32.xlu0 %v1157_v2, %s1076_s12  ;;  %342 = vrot.lane.b32.xlu1 %v1157_v2, %s1077_s13 }
  0x25   : > { %393 = vrot.lane.b32.xlu1 %v1157_v2, %s1078_s14 }
  0x93   : > { %v281_v3 = vpop.permute.xlu0 %280  ;;  %v343_v15 = vpop.permute.xlu1 %342 }
  0x94   : > { %v287_v4 = vsel %vm282_vm1, %v281_v3, 0  ;;  %v349_v16 = vsel %vm347_vm3, %v343_v15, 0 }
  0x95   : > { %951 = vmatpush3.bf16.xpose.msra.mxu0 %v287_v4  ;;  %957 = vmatpush3.bf16.msra.mxu1 %v349_v16 }
  0x96   : > { %968 = vmatprep.subr.bf16.mxu0 %v1074_v0  ;;  %962 = vmatprep.subr.bf16.mxu1 %v1074_v0 }
  0x97   : > { %v394_v22 = vpop.permute.xlu1 %393 }
  0x98   : > { %v399_v28 = vsel %vm282_vm1, %v394_v22, 0 }
  0x9c   : > { %953 = vmatmul.mubr.msk.bf16.vlgmr.msra.gmra.mxu0 %vm282_vm1, %v1157_v2 }
  0x9d   : > { %970 = vmatprep.mubr.msk.bf16.mxu0 %vm1075_vm0, %v1074_v0 }
 0x15c   : > { %v323_v9 = vpop.f32.mrf.mxu0 }
 0x15d   : > { %v329_v10 = vsel %vm1169_vm2, %v323_v9, -1000000.0 }
 0x15e   : > { %v954_v11 = vpop.f32.mrf.mxu0  ;;  %v330_v12 = vsel %vm282_vm1, %v329_v10, -inf }
 0x15f   : > { %331 = vmax.xlane.f32.xlu0 %v330_v12 }
 0x160   : > { %v326_v13 = vpop.f32.mrf.mxu0 }
 0x162   : > { %v955_v14 = vpop.f32.mrf.mxu0 }
 0x175   : > { %615 = vrot.lane.b32.xlu0 %v1157_v2, %s1079_s16 }
 0x1e8   : > { %v332_v17 = vpop.xlane.xlu0 %331 }
 0x1e9   : > { %v333_v18 = vsub.f32 %v329_v10, %v332_v17 }
 0x1eb   : > { %v334_v19 = vmul.f32 1.442695, %v333_v18 }
 0x1ec   : > { %v616_v31 = vpop.permute.xlu0 %615 }
 0x1ed   : > { %1033 = vpow2.f32 %v334_v19  ;;  %v621_v33 = vsel %vm282_vm1, %v616_v31, 0  ;;  %v1031_v31 = vld [vmem:[%s1267_s3 + $0x8] sm:$0xff]  }
 0x1fa   : > { %v1034_v20 = vpop.eup %1033 }
 0x1fb   : > { %v336_v21 = vsel %vm282_vm1, %v1034_v20, 0.0 }
 0x1fc   : > { %337 = vadd.xlane.f32.xlu1 %v336_v21 }
 0x20d   : > { %391 = vrot.lane.b32.xlu1 %v1157_v2, %s1080_s17 }
 0x211   : > { %504 = vrot.lane.b32.xlu1 %v1157_v2, %s1081_s18 }
 0x215   : > { %502 = vrot.lane.b32.xlu1 %v1157_v2, %s1082_s19 }
 0x219   : > { %613 = vrot.lane.b32.xlu1 %v1157_v2, %s1083_s20  ;;  %s270_s20 = scalar_lea.vmem %s1271_s7, %s1151_s8 }
 0x285   : > { %v338_v23 = vpop.xlane.xlu1 %337 }
 0x286   : > { %1035 = vrcp.f32 %v338_v23 }
 0x289   : > { %v392_v26 = vpop.permute.xlu1 %391 }
 0x28d   : > { %v505_v29 = vpop.permute.xlu1 %504 }
 0x28e   : > { %v510_v30 = vsel %vm282_vm1, %v505_v29, 0 }
 0x291   : > { %v503_v32 = vpop.permute.xlu1 %502 }
 0x293   : > { %v1036_v24 = vpop.eup %1035 }
 0x294   : > { %v340_v25 = vmul.f32 %v1036_v24, %v1034_v20 }
 0x295   : > { %v614_v34 = vpop.permute.xlu1 %613 }
 0x296   : > { %v341_v27 = vpack.c.bf16 %v340_v25, %v340_v25 }
 0x298   : > { %959 = vmatmul.mubr.msk.bf16.vlgmr.msra.gmra.mxu1 %vm282_vm1, %v341_v27 }
 0x299   : > { %963 = vmatpush3.bf16.xpose.msra.mxu1 %v399_v28  ;;  %964 = vmatprep.mubr.msk.bf16.mxu1 %vm1075_vm0, %v1074_v0 }
 0x29a   : > { %974 = vmatprep.subr.bf16.mxu1 %v1074_v0 }
 0x2a0   : > { %965 = vmatmul.mubr.msk.bf16.vlgmr.msra.gmra.mxu1 %vm282_vm1, %v392_v26 }
 0x2a1   : > { %975 = vmatpush3.bf16.xpose.msra.mxu1 %v510_v30  ;;  %976 = vmatprep.mubr.msk.bf16.mxu1 %vm1075_vm0, %v1074_v0 }
 0x2a2   : > { %986 = vmatprep.subr.bf16.mxu1 %v1074_v0 }
 0x2a8   : > { %977 = vmatmul.mubr.msk.bf16.vlgmr.msra.gmra.mxu1 %vm282_vm1, %v503_v32  ;;  %v1032_v32 = vld [vmem:[%s1267_s3] sm:$0xff]  }
 0x2a9   : > { %987 = vmatpush3.bf16.xpose.msra.mxu1 %v621_v33  ;;  %988 = vmatprep.mubr.msk.bf16.mxu1 %vm1075_vm0, %v1074_v0 }
 0x2aa   : > { %998 = vmatprep.subr.bf16.mxu1 %v1074_v0 }
 0x2b0   : > { %989 = vmatmul.mubr.msk.bf16.vlgmr.msra.gmra.mxu1 %vm282_vm1, %v614_v34 }
 0x2b1   : > { %1002 = vmatprep.mubr.msk.bf16.mxu1 %vm1075_vm0, %v1074_v0  ;;  %999 = vmatpush3.bf16.msra.mxu1 %v1031_v31 }
 0x2b2   : > { %1000 = vmatprep.subr.bf16.mxu1 %v1074_v0 }
 0x2b5   : > { %1001 = vmatpush3.bf16.msra.mxu1 %v1032_v32 }
 0x358   : > { %v1202_v35 = vpop.f32.mrf.mxu1 }
 0x35a   : > { %v960_v36 = vpop.f32.mrf.mxu1 }
 0x35c   : > { %v388_v37 = vpop.f32.mrf.mxu1 }
 0x35e   : > { %v961_v38 = vpop.f32.mrf.mxu1 }
 0x360   : > { %v435_v39 = vpop.f32.mrf.mxu1 }
 0x361   : > { %v441_v40 = vsel %vm1169_vm2, %v435_v39, -1000000.0 }
 0x362   : > { %v966_v41 = vpop.f32.mrf.mxu1  ;;  %v442_v42 = vsel %vm282_vm1, %v441_v40, -inf }
 0x363   : > { %443 = vmax.xlane.f32.xlu1 %v442_v42 }
 0x364   : > { %v438_v43 = vpop.f32.mrf.mxu1 }
 0x366   : > { %v967_v44 = vpop.f32.mrf.mxu1 }
 0x368   : > { %v546_v45 = vpop.f32.mrf.mxu1 }
 0x369   : > { %v552_v46 = vsel %vm1169_vm2, %v546_v45, -1000000.0 }
 0x36a   : > { %v978_v47 = vpop.f32.mrf.mxu1  ;;  %v553_v48 = vsel %vm282_vm1, %v552_v46, -inf }
 0x36b   : > { %554 = vmax.xlane.f32.xlu0 %v553_v48  ;;  %v923_v48 = vld [vmem:[%s1268_s4] ss:$0 sm:$0xff] }
 0x36c   : > { %v549_v49 = vpop.f32.mrf.mxu1 }
 0x36e   : > { %v979_v50 = vpop.f32.mrf.mxu1 }
 0x36f   : > { %v809_v50 = vld [vmem:[%s266_s11] sm:$0xff] }
 0x370   : > { %v657_v51 = vpop.f32.mrf.mxu1 }
 0x371   : > { %v663_v52 = vsel %vm1169_vm2, %v657_v51, -1000000.0 }
 0x372   : > { %v664_v53 = vsel %vm282_vm1, %v663_v52, -inf  ;;  %v990_v54 = vpop.f32.mrf.mxu1 }
 0x373   : > { %665 = vmax.xlane.f32.xlu1 %v664_v53 }
 0x374   : > { %v660_v55 = vpop.f32.mrf.mxu1 }
 0x376   : > { %v991_v56 = vpop.f32.mrf.mxu1 }
 0x3ec   : > { %v444_v57 = vpop.xlane.xlu1 %443 }
 0x3ed   : > { %v445_v58 = vsub.f32 %v441_v40, %v444_v57 }
 0x3ef   : > { %v446_v59 = vmul.f32 1.442695, %v445_v58 }
 0x3f1   : > { %1037 = vpow2.f32 %v446_v59 }
 0x3f4   : > { %v555_v5 = vpop.xlane.xlu0 %554 }
 0x3f5   : > { %v556_v6 = vsub.f32 %v552_v46, %v555_v5  ;;  %v928_v5 = vld [vmem:[%s1270_s6] ss:$0 sm:$0xff] }
 0x3f7   : > { %v557_v7 = vmul.f32 1.442695, %v556_v6 }
 0x3fc   : > { %v666_v60 = vpop.xlane.xlu1 %665 }
 0x3fd   : > { %v667_v61 = vsub.f32 %v663_v52, %v666_v60 }
 0x3fe   : > { %v1038_v62 = vpop.eup %1037 }
 0x3ff   : > { %v668_v63 = vmul.f32 1.442695, %v667_v61  ;;  %v448_v1 = vsel %vm282_vm1, %v1038_v62, 0.0 }
 0x400   : > { %449 = vadd.xlane.f32.xlu1 %v448_v1 }
 0x401   : > { %1039 = vpow2.f32 %v668_v63 }
 0x402   : > { %1041 = vpow2.f32 %v557_v7 }
 0x40e   : > { %v1040_v3 = vpop.eup %1039 }
 0x40f   : > { %v670_v4 = vsel %vm282_vm1, %v1040_v3, 0.0  ;;  %v1042_v8 = vpop.eup %1041 }
 0x410   : > { %671 = vadd.xlane.f32.xlu0 %v670_v4  ;;  %v559_v9 = vsel %vm282_vm1, %v1042_v8, 0.0 }
 0x411   : > { %454 = vrot.lane.b32.xlu1 %v1157_v2, %s1084_s21 }
 0x426   : > { %565 = vrot.lane.b32.xlu0 %v1157_v2, %s1085_s22 }
 0x435   : > { %560 = vadd.xlane.f32.xlu1 %v559_v9 }
 0x446   : > { %676 = vrot.lane.b32.xlu1 %v1157_v2, %s1086_s23 }
 0x489   : > { %v450_v10 = vpop.xlane.xlu1 %449 }
 0x48a   : > { %1043 = vrcp.f32 %v450_v10 }
 0x48d   : > { %v455_v11 = vpop.permute.xlu1 %454 }
 0x48e   : > { %v460_v12 = vsel %vm347_vm3, %v455_v11, 0 }
 0x48f   : > { %969 = vmatpush3.bf16.msra.mxu0 %v460_v12 }
 0x490   : > { %980 = vmatprep.subr.bf16.mxu0 %v1074_v0 }
 0x497   : > { %v1044_v13 = vpop.eup %1043 }
 0x498   : > { %v452_v14 = vmul.f32 %v1044_v13, %v1038_v62 }
 0x499   : > { %v672_v15 = vpop.xlane.xlu0 %671 }
 0x49a   : > { %v453_v16 = vpack.c.bf16 %v452_v14, %v452_v14 }
 0x49c   : > { %971 = vmatmul.mubr.msk.bf16.vlgmr.msra.gmra.mxu0 %vm282_vm1, %v453_v16 }
 0x49d   : > { %v566_v17 = vpop.permute.xlu0 %565  ;;  %982 = vmatprep.mubr.msk.bf16.mxu0 %vm1075_vm0, %v1074_v0 }
 0x49e   : > { %v571_v2 = vsel %vm347_vm3, %v566_v17, 0 }
 0x49f   : > { %981 = vmatpush3.bf16.msra.mxu0 %v571_v2 }
 0x4a0   : > { %992 = vmatprep.subr.bf16.mxu0 %v1074_v0 }
 0x4be   : > { %v561_v18 = vpop.xlane.xlu1 %560 }
 0x4bf   : > { %1045 = vrcp.f32 %v561_v18 }
 0x4c0   : > { %1047 = vrcp.f32 %v672_v15 }
 0x4c2   : > { %v677_v20 = vpop.permute.xlu1 %676 }
 0x4c3   : > { %v682_v22 = vsel %vm347_vm3, %v677_v20, 0 }
 0x4cc   : > { %v1046_v19 = vpop.eup %1045 }
 0x4cd   : > { %v563_v21 = vmul.f32 %v1046_v19, %v1042_v8  ;;  %v1048_v24 = vpop.eup %1047 }
 0x4ce   : > { %v674_v25 = vmul.f32 %v1048_v24, %v1040_v3  ;;  %v927_v3 = vld [vmem:[%s1269_s5] ss:$0 sm:$0xff] }
 0x4cf   : > { %v564_v23 = vpack.c.bf16 %v563_v21, %v563_v21 }
 0x4d0   : > { %v675_v26 = vpack.c.bf16 %v674_v25, %v674_v25 }
 0x4d1   : > { %983 = vmatmul.mubr.msk.bf16.vlgmr.msra.gmra.mxu0 %vm282_vm1, %v564_v23 }
 0x4d2   : > { %993 = vmatpush3.bf16.msra.mxu0 %v682_v22  ;;  %994 = vmatprep.mubr.msk.bf16.mxu0 %vm1075_vm0, %v1074_v0 }
 0x4d9   : > { %995 = vmatmul.mubr.msk.bf16.vlgmr.msra.gmra.mxu0 %vm282_vm1, %v675_v26 }
 0x55c   : > { %v496_v27 = vpop.f32.mrf.mxu0 }
 0x55d   : > { %725 = vrot.lane.b32.xlu1 %v496_v27, %s1087_s24 }
 0x55e   : > { %v972_v28 = vpop.f32.mrf.mxu0 }
 0x560   : > { %v499_v29 = vpop.f32.mrf.mxu0 }
 0x562   : > { %v973_v30 = vpop.f32.mrf.mxu0 }
 0x591   : > { %v607_v33 = vpop.f32.mrf.mxu0 }
 0x592   : > { %729 = vrot.lane.b32.xlu0 %v607_v33, %s1088_s0 }
 0x593   : > { %v984_v34 = vpop.f32.mrf.mxu0 }
 0x595   : > { %v610_v36 = vpop.f32.mrf.mxu0 }
 0x597   : > { %v985_v37 = vpop.f32.mrf.mxu0 }
 0x599   : > { %v718_v38 = vpop.f32.mrf.mxu0 }
 0x59a   : > { %733 = vrot.lane.b32.xlu1 %v718_v38, %s1089_s30 }
 0x59b   : > { %v996_v39 = vpop.f32.mrf.mxu0 }
 0x59d   : > { %v721_v40 = vpop.f32.mrf.mxu0 }
 0x59f   : > { %v997_v41 = vpop.f32.mrf.mxu0 }
 0x5cf   : > { %v726_v42 = vpop.permute.xlu1 %725 }
 0x5d0   : > { %v736_v0 = vsel %vm282_vm1, %v1202_v35, %v726_v42 }
 0x604   : > { %v730_v43 = vpop.permute.xlu0 %729 }
 0x605   : > { %v738_v44 = vsel %vm737_vm4, %v736_v0, %v730_v43 }
 0x60c   : > { %v734_v45 = vpop.permute.xlu1 %733 }
 0x60d   : > { %v740_v46 = vsel %vm739_vm5, %v738_v44, %v734_v45 }
 0x60e   : > { %v741_v47 = vpack.c.bf16 %v740_v46, %v740_v46 }
 0x610   : > { %1003 = vmatmul.mubr.msk.bf16.vlgmr.msra.gmra.mxu1 %vm765_vm6, %v741_v47 }
 0x6d0   : > { %v803_v49 = vpop.f32.mrf.mxu1 }
 0x6d1   : > { %v804_v51 = vadd.f32 %v923_v48, %v803_v49 }
 0x6d2   : > { %v1004_v52 = vpop.f32.mrf.mxu1 }
 0x6d3   : > { %v810_v35 = vadd.f32 %v809_v50, %v804_v51 }
 0x6d4   : > { %v806_v53 = vpop.f32.mrf.mxu1 }
 0x6d5   : > { %v811_v54 = vsel %vm765_vm6, %v810_v35, 0.0 }
 0x6d6   : > { %812 = vadd.xlane.f32.xlu0 %v811_v54  ;;  %v1005_v55 = vpop.f32.mrf.mxu1 }
 0x75f   : > { %v813_v56 = vpop.xlane.xlu0 %812 }
 0x760   : > { %v815_v57 = vmul.f32 0.03125, %v813_v56 }
 0x762   : > { %v816_v58 = vsub.f32 %v810_v35, %v815_v57 }
 0x764   : > { %v817_v59 = vmul.f32 %v816_v58, %v816_v58 }
 0x766   : > { %v818_v60 = vsel %vm765_vm6, %v817_v59, 0.0 }
 0x767   : > { %819 = vadd.xlane.f32.xlu1 %v818_v60 }
 0x7f0   : > { %v820_v61 = vpop.xlane.xlu1 %819 }
 0x7f1   : > { %v821_v62 = vmul.f32 0.03125, %v820_v61 }
 0x7f3   : > { %v822_v63 = vadd.f32 1e-05, %v821_v62 }
 0x7f5   : > { %1049 = vrsqrt.f32 %v822_v63 }
 0x802   : > { %v1050_v1 = vpop.eup %1049 }
 0x803   : > { %v824_v4 = vmul.f32 %v1050_v1, %v816_v58 }
 0x805   : > { %v832_v6 = vmul.f32 %v927_v3, %v824_v4 }
 0x807   : > { %v840_v7 = vadd.f32 %v928_v5, %v832_v6 }
 0x809   : > { %841 = vst.msk [vmem:[%s270_s20] sm:$0xff] %vm765_vm6, %v840_v7 }
 0x80a PF: > { %s23_s29 = sadd.s32 1, %s1071_s29  }
 0x80b   : > { %p20_p9 = scmp.ge.s32.totalorder %s23_s29, 4  }
 0x80d   :  { %22 = sbr.rel (!%p20_p9) target bundleno = 16 (0x10), region = 77 }

// kernel: bert_encoder_forward.15
= control target key start
LH: loop header
LB: loop body
LE: loop exit
PB: predicated region body
PF: predicated region fallthrough
CT: control target
= control target key end

     0   :  { %v260_v1 = vmov 0.0   ;;  %vm261_vm0 = vmmov 0   ;;  %vm29_vm1 = vcmask 261120   ;;  %s346_s0 = inlined_call_operand.vmem [shape: f32[16,64], index: 0, kind: input, shape index: {}]   ;;  %s347_s1 = inlined_call_operand.vmem [shape: bf16[64,32], index: 1, kind: input, shape index: {}]   ;;  %s348_s2 = inlined_call_operand.vmem [shape: f32[1,32], index: 2, kind: input, shape index: {}]   ;;  %s349_s3 = inlined_call_operand.vmem [shape: f32[16,32], index: 3, kind: input, shape index: {}]   ;;  %s350_s4 = inlined_call_operand.vmem [shape: f32[1,32], index: 4, kind: input, shape index: {}]   ;;  %s351_s5 = inlined_call_operand.vmem [shape: f32[1,32], index: 5, kind: input, shape index: {}]   ;;  %s352_s6 = inlined_call_operand.hbm [shape: f32[16,32], index: 6, kind: output, shape index: {}]  }
   0x1   :  { %v230_v0 = vld [vmem:[%s347_s1 + $0x18] sm:$0xff]   ;;  %213 = vmatprep.subr.bf16.mxu0 %v260_v1  ;;  %v231_v2 = vld [vmem:[%s347_s1 + $0x10] sm:$0xff]   ;;  %221 = vmatprep.mubr.msk.bf16.mxu0 %vm261_vm0, %v260_v1  ;;  %30 = vst.msk [vmem:[#allocation2] sm:$0xff] %vm29_vm1, %v260_v1  ;;  %31 = vst.msk [vmem:[#allocation2 + $0x8] sm:$0xff] %vm29_vm1, %v260_v1 }
   0x2   :  { %214 = vmatpush3.bf16.msra.mxu0 %v230_v0 }
   0x3   :  { %215 = vmatprep.subr.bf16.mxu0 %v260_v1 }
   0x4   :  { %11 = vsyncpa [#allocation4], 0  ;;  %v232_v3 = vld [vmem:[%s347_s1 + $0x8] sm:$0xff]   ;;  %v233_v4 = vld [vmem:[%s347_s1] sm:$0xff]   ;;  %vm69_vm2 = vcmask 523264   ;;  %s262_s15 = smov [#allocation3]  }
   0x5   :  { %v34_v5 = vld [vmem:[%s346_s0] sm:$0xff]  ;;  %v35_v6 = vld [vmem:[%s346_s0 + $0x8] sm:$0xff]  ;;  %s189_s16 = sshll.u32 %s262_s15, 4  ;;  %s190_s16 = int_to_ptr.vmem [resolvable:$true] %s189_s16 }
   0x6   :  { %216 = vmatpush3.bf16.msra.mxu0 %v231_v2  ;;  %v36_v7 = vpack.c.bf16 %v35_v6, %v34_v5  ;;  %v205_v16 = vld [vmem:[%s348_s2] ss:$0 sm:$0xff]  ;;  %v134_v22 = vld [vmem:[%s349_s3 + $0x8] sm:$0xff]  ;;  %s238_s17 = scalar_lea.vmem %s190_s16, 256  ;;  %p243_p1 = scmp.lt.s32.totalorder %s190_s16, %s190_s16 }
   0x7   :  { %217 = vmatprep.subr.bf16.mxu0 %v260_v1  ;;  %v133_v18 = vld [vmem:[%s349_s3] sm:$0xff]  ;;  %p239_p0 = scmp.ne.s32.totalorder %s190_s16, %s238_s17  ;;  %p244_p2 = scmp.lt.s32.totalorder %s238_s17, %s238_s17 }
   0x8   :  { %v32_v8 = vld [vmem:[#allocation2] sm:$0xff]  ;;  %v33_v12 = vld [vmem:[#allocation2 + $0x8] sm:$0xff] }
   0x9   :  { %v206_v44 = vld [vmem:[%s350_s4] ss:$0 sm:$0xff]  ;;  %p245_p3 = por %p244_p2, %p243_p1 }
   0xa   :  { %218 = vmatpush3.bf16.msra.mxu0 %v232_v3  ;;  %v207_v46 = vld [vmem:[%s351_s5] ss:$0 sm:$0xff] }
   0xb   :  { %219 = vmatprep.subr.bf16.mxu0 %v260_v1  ;;  %p246_p4 = pnand %p245_p3, %p239_p0 }
   0xe   :  { %220 = vmatpush3.bf16.msra.mxu0 %v233_v4 }
  0x11   :  { %222 = vmatmul.mubr.msk.bf16.vlgmr.msra.gmra.mxu0 %vm69_vm2, %v36_v7 }
  0xd1   :  { %v107_v9 = vpop.f32.mrf.mxu0 }
  0xd2   :  { %v114_v10 = vadd.f32 %v107_v9, %v32_v8 }
  0xd3   :  { %v223_v11 = vpop.f32.mrf.mxu0 }
  0xd4   :  { %117 = vst.msk [vmem:[#allocation2] sm:$0xff] %vm29_vm1, %v114_v10 }
  0xd5   :  { %v110_v13 = vpop.f32.mrf.mxu0 }
  0xd6   :  { %v115_v14 = vadd.f32 %v110_v13, %v33_v12 }
  0xd7   :  { %v224_v15 = vpop.f32.mrf.mxu0 }
  0xd8   :  { %118 = vst.msk [vmem:[#allocation2 + $0x8] sm:$0xff] %vm29_vm1, %v115_v14 }
  0xdb   :  { %v122_v17 = vld [vmem:[#allocation2] sm:$0xff] }
  0xdc   :  { %v131_v19 = vadd.f32 %v205_v16, %v122_v17 }
  0xde   :  { %v135_v20 = vadd.f32 %v133_v18, %v131_v19 }
  0xdf   :  { %v123_v21 = vld [vmem:[#allocation2 + $0x8] sm:$0xff] }
  0xe0   :  { %v137_v23 = vsel %vm29_vm1, %v135_v20, 0.0  ;;  %v132_v24 = vadd.f32 %v205_v16, %v123_v21 }
  0xe1   :  { %138 = vadd.xlane.f32.xlu0 %v137_v23 }
  0xe2   :  { %v136_v25 = vadd.f32 %v134_v22, %v132_v24 }
  0xe4   :  { %v140_v26 = vsel %vm29_vm1, %v136_v25, 0.0 }
  0xe5   :  { %141 = vadd.xlane.f32.xlu0 %v140_v26 }
 0x16a   :  { %v139_v27 = vpop.xlane.xlu0 %138 }
 0x16b   :  { %v144_v28 = vmul.f32 0.03125, %v139_v27 }
 0x16d   :  { %v146_v29 = vsub.f32 %v135_v20, %v144_v28 }
 0x16e   :  { %v142_v30 = vpop.xlane.xlu0 %141 }
 0x16f   :  { %v145_v31 = vmul.f32 0.03125, %v142_v30  ;;  %v148_v32 = vmul.f32 %v146_v29, %v146_v29 }
 0x171   :  { %v147_v33 = vsub.f32 %v136_v25, %v145_v31  ;;  %v150_v34 = vsel %vm29_vm1, %v148_v32, 0.0 }
 0x172   :  { %151 = vadd.xlane.f32.xlu1 %v150_v34 }
 0x173   :  { %v149_v35 = vmul.f32 %v147_v33, %v147_v33 }
 0x175   :  { %v153_v36 = vsel %vm29_vm1, %v149_v35, 0.0 }
 0x176   :  { %154 = vadd.xlane.f32.xlu1 %v153_v36 }
 0x1fb   :  { %v152_v37 = vpop.xlane.xlu1 %151 }
 0x1fc   :  { %v156_v38 = vmul.f32 0.03125, %v152_v37 }
 0x1fe   :  { %v158_v39 = vadd.f32 1e-05, %v156_v38 }
 0x1ff   :  { %v155_v40 = vpop.xlane.xlu1 %154 }
 0x200   :  { %234 = vrsqrt.f32 %v158_v39  ;;  %v157_v41 = vmul.f32 0.03125, %v155_v40 }
 0x202   :  { %v159_v42 = vadd.f32 1e-05, %v157_v41 }
 0x204   :  { %236 = vrsqrt.f32 %v159_v42 }
 0x20d   :  { %v235_v43 = vpop.eup %234 }
 0x20e   :  { %v162_v45 = vmul.f32 %v235_v43, %v146_v29 }
 0x210   :  { %v171_v47 = vmul.f32 %v206_v44, %v162_v45 }
 0x211   :  { %v237_v48 = vpop.eup %236 }
 0x212   :  { %v163_v49 = vmul.f32 %v237_v48, %v147_v33  ;;  %v180_v50 = vadd.f32 %v207_v46, %v171_v47 }
 0x214   :  { %v172_v51 = vmul.f32 %v206_v44, %v163_v49  ;;  %182 = vst.msk [vmem:[#allocation3] sm:$0xff] %vm29_vm1, %v180_v50 }
 0x216   :  { %v181_v52 = vadd.f32 %v207_v46, %v172_v51 }
 0x218   :  { %183 = vst.msk [vmem:[#allocation3 + $0x8] sm:$0xff] %vm29_vm1, %v181_v52 }
 0x219   :  { %249 = shalt.err (!%p246_p4)
}
 0x21a   :  { %s263_s4 = smov 128   ;;  %s264_s5 = smov 8  }
 0x21b   :  { %195 = dma.vmem_to_hbm [thread:$0]  %s190_s16, 256, %s352_s6, [#allocation4], %s263_s4, %s263_s4, %s264_s5  }
 0x21c   :  { %258 = dma.done.wait [#allocation4], 256  }
 0x21d   :  { %259 = vsyncadd [#allocation4], 4294967040 }
 0x21e   :  { %199 = vsyncpa [#allocation4], 1 }

</bundles_post_ra>
